<compile_context>
chip_gen: v5e
topology: v5e:2x2
jax: 0.10.0
libtpu: 0.0.40
codegen_flags: <defaults>
</compile_context>

<pallas_src>
import functools
import math

import jax
import jax.numpy as jnp
from jax import lax
from jax.experimental import pallas as pl
from jax.experimental.pallas import tpu as pltpu


def _round_up(x: int, m: int) -> int:
    return ((x + m - 1) // m) * m


def _ffn_kernel(x_ref, w1_ref, b1_ref, w2_ref, b2_ref, o_ref, *, precision):
    # x_ref : [TILE_M, PACK*D_in]   packed-row tile, streamed over the grid
    # w1_ref: [PACK*D_in, PACK*H]   block-diagonal W1^T  (VMEM resident)
    # b1_ref: [1, PACK*H]           tiled bias (f32)
    # w2_ref: [PACK*H, PACK*D_out]  block-diagonal W2^T  (VMEM resident)
    # b2_ref: [1, PACK*D_out]       tiled bias (f32)
    # o_ref : [TILE_M, PACK*D_out]  lane-dense output tile
    x = x_ref[...]
    h = jnp.dot(x, w1_ref[...], preferred_element_type=jnp.float32,
                precision=precision)
    h = jnp.tanh(h + b1_ref[...])          # dropout(p=0) is identity in forward
    y = jnp.dot(h.astype(w2_ref.dtype), w2_ref[...],
                preferred_element_type=jnp.float32, precision=precision)
    o_ref[...] = (y + b2_ref[...]).astype(o_ref.dtype)


def simple_feed_forward(x, w1, b1, w2, b2, *, compute_dtype=None):
    """y = tanh(x @ W1^T + b1) @ W2^T + b2.

    x : [batch, seq, D_in]; w1: [H, D_in]; b1: [H]; w2: [D_out, H]; b2: [D_out]
    (PyTorch nn.Linear weight layout is [out_features, in_features].)
    compute_dtype: None -> use x.dtype (f32 path, HIGHEST-precision dots);
                   jnp.bfloat16 -> bf16 activations/weights, f32 accumulation.
    """
    batch, seq, d_in = x.shape
    hidden = w1.shape[0]
    d_out = w2.shape[0]
    n = batch * seq
    out_dtype = x.dtype
    cdt = jnp.dtype(compute_dtype) if compute_dtype is not None else jnp.dtype(out_dtype)

    # --- lane packing: PACK rows per packed row so PACK*D_out is a multiple of
    # 128 (unmasked full-lane output stores); capped so the block-diagonal
    # weights stay small and VMEM-resident. For D_in=32/H=24/D_out=16: PACK=8,
    # packed dims 256 / 192 / 128.
    pack = 128 // math.gcd(128, d_out)
    while pack > 1 and pack * max(d_in, hidden, d_out) > 2048:
        pack //= 2
    pd_in, pd_h, pd_out = pack * d_in, pack * hidden, pack * d_out

    # --- row tiling over packed rows: large tiles (amortize ~0.35us/step),
    # tile derived from N so padding waste is bounded, >=2 steps when there is
    # enough data so both v7x TensorCores are used.
    m = pl.cdiv(n, pack)                       # packed rows of real data
    max_tile = 1024
    steps = max(2, pl.cdiv(m, max_tile))
    tile_m = max(16, _round_up(pl.cdiv(m, steps), 16))
    m_pad = _round_up(m, tile_m)
    grid = (m_pad // tile_m,)

    precision = (lax.Precision.HIGHEST if cdt == jnp.float32
                 else lax.Precision.DEFAULT)

    # Row padding only (no feature-dim padding of the activation stream).
    # TODO(synk): in a jit'd pipeline with bf16-resident activations the
    # astype below disappears; here x arrives as f32 so the cast is one extra
    # cheap XLA pass.
    x2d = x.reshape(n, d_in).astype(cdt)
    x2d = jnp.pad(x2d, ((0, m_pad * pack - n), (0, 0)))
    x_packed = x2d.reshape(m_pad, pd_in)       # free row-major view

    # Block-diagonal weights (W^T repeated `pack` times) and tiled biases.
    eye = jnp.eye(pack, dtype=cdt)
    w1_bd = jnp.kron(eye, w1.T.astype(cdt))            # [pd_in, pd_h]
    w2_bd = jnp.kron(eye, w2.T.astype(cdt))            # [pd_h, pd_out]
    b1_t = jnp.tile(b1.astype(jnp.float32), pack).reshape(1, pd_h)
    b2_t = jnp.tile(b2.astype(jnp.float32), pack).reshape(1, pd_out)

    cost = pl.CostEstimate(
        flops=2 * m_pad * (pd_in * pd_h + pd_h * pd_out),
        transcendentals=m_pad * pd_h,
        bytes_accessed=((m_pad * pd_in + pd_in * pd_h + pd_h * pd_out) * cdt.itemsize
                        + (pd_h + pd_out) * 4
                        + m_pad * pd_out * jnp.dtype(out_dtype).itemsize),
    )

    out = pl.pallas_call(
        functools.partial(_ffn_kernel, precision=precision),
        out_shape=jax.ShapeDtypeStruct((m_pad, pd_out), out_dtype),
        grid=grid,
        in_specs=[
            pl.BlockSpec((tile_m, pd_in), lambda i: (i, 0)),   # x: streamed rows
            pl.BlockSpec((pd_in, pd_h), lambda i: (0, 0)),     # W1 block-diag: resident
            pl.BlockSpec((1, pd_h), lambda i: (0, 0)),         # b1: resident
            pl.BlockSpec((pd_h, pd_out), lambda i: (0, 0)),    # W2 block-diag: resident
            pl.BlockSpec((1, pd_out), lambda i: (0, 0)),       # b2: resident
        ],
        out_specs=pl.BlockSpec((tile_m, pd_out), lambda i: (i, 0)),
        compiler_params=pltpu.CompilerParams(
            dimension_semantics=("parallel",),
        ),
        cost_estimate=cost,
    )(x_packed, w1_bd, b1_t, w2_bd, b2_t)

    # Packed output unpacks exactly back to rows; only the (small) row pad is
    # sliced off — no column slice.
    return out.reshape(m_pad * pack, d_out)[:n].reshape(batch, seq, d_out)


def _ref_forward(x, w1, b1, w2, b2):
    h = jnp.tanh(jnp.einsum("bsd,hd->bsh", x, w1,
                            precision=lax.Precision.HIGHEST) + b1)
    return jnp.einsum("bsh,oh->bso", h, w2,
                      precision=lax.Precision.HIGHEST) + b2


if __name__ == "__main__":
    # Shapes consistent with the module: token features [batch, seq, input_dim].
    batch, seq = 2, 8
    input_dim, output_dim = 32, 16
    hidden = (input_dim + output_dim) // 2  # 24

    key = jax.random.PRNGKey(0)
    kx, k1, kb1, k2, kb2 = jax.random.split(key, 5)

    x = jax.random.normal(kx, (batch, seq, input_dim), dtype=jnp.float32)
    # PyTorch Linear stores weight as [out_features, in_features].
    w1 = jax.random.normal(k1, (hidden, input_dim), dtype=jnp.float32) * 0.1
    b1 = jax.random.normal(kb1, (hidden,), dtype=jnp.float32) * 0.1
    w2 = jax.random.normal(k2, (output_dim, hidden), dtype=jnp.float32) * 0.1
    b2 = jax.random.normal(kb2, (output_dim,), dtype=jnp.float32) * 0.1
    # linear_projection_mid1 / linear_projection_mid2 exist in __init__ but are
    # never used in forward(), so they have no kernel counterpart.

    y_ref = _ref_forward(x, w1, b1, w2, b2)

    # f32 path (default): matches the PyTorch module's f32 numerics (HIGHEST dots).
    y = simple_feed_forward(x, w1, b1, w2, b2)
    jax.block_until_ready(y)
    assert y.shape == (batch, seq, output_dim)
    assert jnp.allclose(y, y_ref, atol=1e-5, rtol=1e-5), "f32 mismatch vs reference"

    # bf16 activation/weight path (halves the dominant HBM stream; f32 accum).
    y_bf16 = simple_feed_forward(x, w1, b1, w2, b2, compute_dtype=jnp.bfloat16)
    jax.block_until_ready(y_bf16)
    assert jnp.allclose(y_bf16, y_ref, atol=3e-2, rtol=3e-2), "bf16 mismatch vs reference"

    print("KERNEL_OK")
</pallas_src>

<mosaic_0001>
module attributes {stable_mosaic.version = 11 : i64} {
  func.func @_ffn_kernel(%arg0: i32, %arg1: memref<16x256xf32, #tpu.memory_space<vmem>>, %arg2: memref<256x192xf32, #tpu.memory_space<vmem>>, %arg3: memref<1x192xf32, #tpu.memory_space<vmem>>, %arg4: memref<192x128xf32, #tpu.memory_space<vmem>>, %arg5: memref<1x128xf32, #tpu.memory_space<vmem>>, %arg6: memref<16x128xf32, #tpu.memory_space<vmem>>) attributes {dimension_semantics = [#tpu.dimension_semantics<parallel>], iteration_bounds = array<i64: 1>, scalar_prefetch = 0 : i64, scratch_operands = 0 : i64, tpu.core_type = #tpu.core_type<tc>, window_params = [{transform_indices = @transform_0, window_bounds = array<i64: 16, 256>}, {pipeline_mode = #tpu.pipeline_mode<synchronous>, transform_indices = @transform_1, window_bounds = array<i64: 256, 192>}, {pipeline_mode = #tpu.pipeline_mode<synchronous>, transform_indices = @transform_2, window_bounds = array<i64: 1, 192>}, {pipeline_mode = #tpu.pipeline_mode<synchronous>, transform_indices = @transform_3, window_bounds = array<i64: 192, 128>}, {pipeline_mode = #tpu.pipeline_mode<synchronous>, transform_indices = @transform_4, window_bounds = array<i64: 1, 128>}, {transform_indices = @transform_5, window_bounds = array<i64: 16, 128>}]} {
    %c0 = arith.constant 0 : index
    %c0_0 = arith.constant 0 : index
    %0 = vector.load %arg1[%c0, %c0_0] : memref<16x256xf32, #tpu.memory_space<vmem>>, vector<16x256xf32>
    %c0_1 = arith.constant 0 : index
    %c0_2 = arith.constant 0 : index
    %1 = vector.load %arg2[%c0_1, %c0_2] : memref<256x192xf32, #tpu.memory_space<vmem>>, vector<256x192xf32>
    %cst = arith.constant dense<0.000000e+00> : vector<16x192xf32>
    %2 = tpu.matmul %0, %1, %cst {dimension_numbers = #tpu.dot_dimension_numbers<[1], [0], [0], [1], [0, 0, 1, 1], [], []>, precision = #tpu.contract_precision<fp32>} : vector<16x256xf32>, vector<256x192xf32>, vector<16x192xf32> -> vector<16x192xf32>
    %c0_3 = arith.constant 0 : index
    %c0_4 = arith.constant 0 : index
    %3 = vector.load %arg3[%c0_3, %c0_4] : memref<1x192xf32, #tpu.memory_space<vmem>>, vector<1x192xf32>
    %4 = vector.broadcast %3 : vector<1x192xf32> to vector<16x192xf32>
    %5 = arith.addf %2, %4 : vector<16x192xf32>
    %6 = math.tanh %5 : vector<16x192xf32>
    %c0_5 = arith.constant 0 : index
    %c0_6 = arith.constant 0 : index
    %7 = vector.load %arg4[%c0_5, %c0_6] : memref<192x128xf32, #tpu.memory_space<vmem>>, vector<192x128xf32>
    %cst_7 = arith.constant dense<0.000000e+00> : vector<16x128xf32>
    %8 = tpu.matmul %6, %7, %cst_7 {dimension_numbers = #tpu.dot_dimension_numbers<[1], [0], [0], [1], [0, 0, 1, 1], [], []>, precision = #tpu.contract_precision<fp32>} : vector<16x192xf32>, vector<192x128xf32>, vector<16x128xf32> -> vector<16x128xf32>
    %c0_8 = arith.constant 0 : index
    %c0_9 = arith.constant 0 : index
    %9 = vector.load %arg5[%c0_8, %c0_9] : memref<1x128xf32, #tpu.memory_space<vmem>>, vector<1x128xf32>
    %10 = vector.broadcast %9 : vector<1x128xf32> to vector<16x128xf32>
    %11 = arith.addf %8, %10 : vector<16x128xf32>
    %c0_10 = arith.constant 0 : index
    %c0_11 = arith.constant 0 : index
    %12 = vector.load %arg6[%c0_10, %c0_11] : memref<16x128xf32, #tpu.memory_space<vmem>>, vector<16x128xf32>
    tpu.vector_store %arg6[%c0_10, %c0_11], %11 {strides = array<i32>} : memref<16x128xf32, #tpu.memory_space<vmem>>, vector<16x128xf32>,
    return
  }
  func.func @transform_0(%arg0: i32) -> (i32, i32) {
    %c0_i32 = arith.constant 0 : i32
    %c0_i32_0 = arith.constant 0 : i32
    return %arg0, %c0_i32 : i32, i32
  }
  func.func @transform_1(%arg0: i32) -> (i32, i32) {
    %c0_i32 = arith.constant 0 : i32
    %c0_i32_0 = arith.constant 0 : i32
    %c0_i32_1 = arith.constant 0 : i32
    return %c0_i32, %c0_i32_0 : i32, i32
  }
  func.func @transform_2(%arg0: i32) -> (i32, i32) {
    %c0_i32 = arith.constant 0 : i32
    %c0_i32_0 = arith.constant 0 : i32
    %c0_i32_1 = arith.constant 0 : i32
    return %c0_i32, %c0_i32_0 : i32, i32
  }
  func.func @transform_3(%arg0: i32) -> (i32, i32) {
    %c0_i32 = arith.constant 0 : i32
    %c0_i32_0 = arith.constant 0 : i32
    %c0_i32_1 = arith.constant 0 : i32
    return %c0_i32, %c0_i32_0 : i32, i32
  }
  func.func @transform_4(%arg0: i32) -> (i32, i32) {
    %c0_i32 = arith.constant 0 : i32
    %c0_i32_0 = arith.constant 0 : i32
    %c0_i32_1 = arith.constant 0 : i32
    return %c0_i32, %c0_i32_0 : i32, i32
  }
  func.func @transform_5(%arg0: i32) -> (i32, i32) {
    %c0_i32 = arith.constant 0 : i32
    %c0_i32_0 = arith.constant 0 : i32
    return %arg0, %c0_i32 : i32, i32
  }
}

</mosaic_0001>

<bundles_post_ra>
// kernel: tpu_custom_call.1
= control target key start
LH: loop header
LB: loop body
LE: loop exit
PB: predicated region body
PF: predicated region fallthrough
CT: control target
= control target key end

     0   :  { %s4089_s0 = inlined_call_operand.vmem [shape: f32[16,256], index: 0, kind: input, shape index: {}]   ;;  %s4090_s1 = inlined_call_operand.vmem [shape: f32[256,192], index: 1, kind: input, shape index: {}]   ;;  %s4091_s2 = inlined_call_operand.vmem [shape: f32[1,192], index: 2, kind: input, shape index: {}]   ;;  %s4092_s3 = inlined_call_operand.vmem [shape: f32[192,128], index: 3, kind: input, shape index: {}]   ;;  %s4093_s4 = inlined_call_operand.vmem [shape: f32[1,128], index: 4, kind: input, shape index: {}]   ;;  %s4094_s5 = inlined_call_operand.hbm [shape: f32[16,128], index: 5, kind: output, shape index: {}]  }
   0x1   :  { %v55_v0 = vld [vmem:[%s4090_s1 + $0xf0] sm:$0xff]  ;;  %v53_v1 = vld [vmem:[%s4090_s1 + $0xe0] sm:$0xff] }
   0x2   :  { %v51_v2 = vld [vmem:[%s4090_s1 + $0xd0] sm:$0xff]  ;;  %v2378_v3 = vand.u32 4294901760, %v55_v0  ;;  %v2380_v4 = vand.u32 4294901760, %v53_v1  ;;  %v49_v6 = vld [vmem:[%s4090_s1 + $0xc0] sm:$0xff] }
   0x3   :  { %v2382_v5 = vand.u32 4294901760, %v51_v2  ;;  %v47_v7 = vld [vmem:[%s4090_s1 + $0xb0] sm:$0xff]  ;;  %v45_v8 = vld [vmem:[%s4090_s1 + $0xa0] sm:$0xff]  ;;  %v2393_v9 = vand.u32 4294901760, %v49_v6 }
   0x4   :  { %v2395_v10 = vand.u32 4294901760, %v47_v7  ;;  %v2397_v11 = vand.u32 4294901760, %v45_v8  ;;  %v43_v12 = vld [vmem:[%s4090_s1 + $0x90] sm:$0xff]  ;;  %v41_v13 = vld [vmem:[%s4090_s1 + $0x80] sm:$0xff]  ;;  %96 = vmatpush.msra.mxu0 %v2378_v3  ;;  %v2407_v14 = vsub.f32 %v55_v0, %v2378_v3  ;;  %v2410_v15 = vsub.f32 %v53_v1, %v2380_v4  ;;  %309 = vmatpush.msra.mxu3 %v2378_v3 }
   0x5   :  { %v2414_v16 = vsub.f32 %v51_v2, %v2382_v5  ;;  %v2416_v17 = vand.u32 4294901760, %v43_v12  ;;  %v39_v18 = vld [vmem:[%s4090_s1 + $0x70] sm:$0xff]  ;;  %v2422_v19 = vsub.f32 %v49_v6, %v2393_v9  ;;  %v2427_v21 = vand.u32 4294901760, %v41_v13  ;;  %v37_v26 = vld [vmem:[%s4090_s1 + $0x60] sm:$0xff] }
   0x6   :  { %v2425_v20 = vsub.f32 %v47_v7, %v2395_v10  ;;  %98 = vmatpush.msra.mxu0 %v2380_v4  ;;  %251 = vmatpush.msra.mxu2 %v2407_v14  ;;  %v146_v22 = vand.u32 4294901760, %v2407_v14  ;;  %v152_v23 = vand.u32 4294901760, %v2410_v15  ;;  %v2435_v25 = vsub.f32 %v45_v8, %v2397_v11  ;;  %v35_v36 = vld [vmem:[%s4090_s1 + $0x50] sm:$0xff] }
   0x7   :  { %v4108_v24 = vand.u32 4294901760, %v2414_v16  ;;  %311 = vmatpush.msra.mxu3 %v2380_v4  ;;  %v4107_v27 = vand.u32 4294901760, %v2422_v19  ;;  %v2442_v28 = vand.u32 4294901760, %v39_v18  ;;  %v2445_v29 = vsub.f32 %v43_v12, %v2416_v17 }
   0x8   :  { %100 = vmatpush.msra.mxu0 %v2382_v5  ;;  %254 = vmatpush.msra.mxu2 %v2410_v15  ;;  %v147_v30 = vsub.f32 %v2407_v14, %v146_v22  ;;  %v153_v31 = vsub.f32 %v2410_v15, %v152_v23  ;;  %v4104_v33 = vand.u32 4294901760, %v2425_v20  ;;  %v2460_v34 = vand.u32 4294901760, %v37_v26 }
   0x9   :  { %v159_v32 = vsub.f32 %v2414_v16, %v4108_v24  ;;  %313 = vmatpush.msra.mxu3 %v2382_v5  ;;  %v2463_v35 = vsub.f32 %v41_v13, %v2427_v21 }
   0xa   :  { %10 = vsyncpa [#allocation3], 0  ;;  %102 = vmatpush.msra.mxu0 %v2393_v9  ;;  %v148_v37 = vand.u32 4294901760, %v147_v30  ;;  %257 = vmatpush.msra.mxu2 %v2414_v16  ;;  %v154_v38 = vand.u32 4294901760, %v153_v31  ;;  %v165_v39 = vsub.f32 %v2422_v19, %v4107_v27  ;;  %v4103_v40 = vand.u32 4294901760, %v2435_v25  ;;  %v33_v42 = vld [vmem:[%s4090_s1 + $0x40] sm:$0xff] }
   0xb   :  { %315 = vmatpush.msra.mxu3 %v2393_v9  ;;  %v2476_v41 = vsub.f32 %v39_v18, %v2442_v28  ;;  %v160_v43 = vand.u32 4294901760, %v159_v32  ;;  %v171_v44 = vsub.f32 %v2425_v20, %v4104_v33  ;;  %v2485_v45 = vand.u32 4294901760, %v35_v36  ;;  %v31_v48 = vld [vmem:[%s4090_s1 + $0x30] sm:$0xff]  ;;  %v29_v54 = vld [vmem:[%s4090_s1 + $0x20] sm:$0xff]  ;;  %s2270_s24 = sshll.u32 %s4094_s5, 4  ;;  %s2337_s25 = smov 128   ;;  %s2271_s24 = int_to_ptr.hbm [resolvable:$true] %s2270_s24 }
   0xc   :  { %104 = vmatpush.msra.mxu0 %v2395_v10  ;;  %149 = vmatpush.msra.mxu1 %v148_v37  ;;  %v4101_v46 = vand.u32 4294901760, %v2445_v29  ;;  %v4100_v47 = vand.u32 4294901760, %v2463_v35  ;;  %v166_v49 = vand.u32 4294901760, %v165_v39  ;;  %v177_v50 = vsub.f32 %v2435_v25, %v4103_v40  ;;  %v87_v59 = vld [vmem:[%s4090_s1 + $0x1f0] sm:$0xff]  ;;  %v85_v2 = vld [vmem:[%s4090_s1 + $0x1e0] sm:$0xff] }
   0xd   :  { %260 = vmatpush.msra.mxu2 %v2422_v19  ;;  %317 = vmatpush.msra.mxu3 %v2395_v10  ;;  %v2498_v51 = vand.u32 4294901760, %v33_v42  ;;  %v2501_v52 = vsub.f32 %v37_v26, %v2460_v34  ;;  %v4098_v53 = vand.u32 4294901760, %v2476_v41  ;;  %v172_v55 = vand.u32 4294901760, %v171_v44  ;;  %v27_v61 = vld [vmem:[%s4090_s1 + $0x10] sm:$0xff]  ;;  %v25_v7 = vld [vmem:[%s4090_s1] sm:$0xff] }
   0xe   :  { %106 = vmatpush.msra.mxu0 %v2397_v11  ;;  %155 = vmatpush.msra.mxu1 %v154_v38  ;;  %v183_v56 = vsub.f32 %v2445_v29, %v4101_v46  ;;  %v2513_v57 = vand.u32 4294901760, %v31_v48  ;;  %v2516_v58 = vsub.f32 %v35_v36, %v2485_v45  ;;  %v189_v60 = vsub.f32 %v2463_v35, %v4100_v47  ;;  %v83_v32 = vld [vmem:[%s4090_s1 + $0x1d0] sm:$0xff] }
   0xf   :  { %263 = vmatpush.msra.mxu2 %v2425_v20  ;;  %319 = vmatpush.msra.mxu3 %v2397_v11  ;;  %v178_v62 = vand.u32 4294901760, %v177_v50  ;;  %v2530_v63 = vand.u32 4294901760, %v29_v54  ;;  %v4097_v0 = vand.u32 4294901760, %v2501_v52  ;;  %v2534_v1 = vsub.f32 %v33_v42, %v2498_v51  ;;  %v81_v42 = vld [vmem:[%s4090_s1 + $0x1c0] sm:$0xff] }
  0x10   :  { %108 = vmatpush.msra.mxu0 %v2416_v17  ;;  %161 = vmatpush.msra.mxu1 %v160_v43  ;;  %v195_v6 = vsub.f32 %v2476_v41, %v4098_v53  ;;  %v2547_v8 = vand.u32 4294901760, %v87_v59  ;;  %v184_v12 = vand.u32 4294901760, %v183_v56  ;;  %v2550_v13 = vand.u32 4294901760, %v27_v61 }
  0x11   :  { %266 = vmatpush.msra.mxu2 %v2435_v25  ;;  %321 = vmatpush.msra.mxu3 %v2416_v17  ;;  %v4096_v18 = vand.u32 4294901760, %v2516_v58  ;;  %v2554_v26 = vsub.f32 %v31_v48, %v2513_v57  ;;  %v190_v30 = vand.u32 4294901760, %v189_v60  ;;  %v2558_v31 = vand.u32 4294901760, %v85_v2 }
  0x12   :  { %110 = vmatpush.msra.mxu0 %v2427_v21  ;;  %167 = vmatpush.msra.mxu1 %v166_v49  ;;  %v201_v36 = vsub.f32 %v2501_v52, %v4097_v0  ;;  %v2567_v37 = vand.u32 4294901760, %v25_v7  ;;  %v4095_v38 = vand.u32 4294901760, %v2534_v1  ;;  %v2571_v39 = vsub.f32 %v29_v54, %v2530_v63 }
  0x13   :  { %269 = vmatpush.msra.mxu2 %v2445_v29  ;;  %323 = vmatpush.msra.mxu3 %v2427_v21  ;;  %v196_v43 = vand.u32 4294901760, %v195_v6  ;;  %v2579_v44 = vsub.f32 %v87_v59, %v2547_v8  ;;  %v207_v48 = vsub.f32 %v2516_v58, %v4096_v18  ;;  %v4099_v49 = vand.u32 4294901760, %v2554_v26 }
  0x14   :  { %112 = vmatpush.msra.mxu0 %v2442_v28  ;;  %173 = vmatpush.msra.mxu1 %v172_v55  ;;  %v2587_v50 = vsub.f32 %v27_v61, %v2550_v13  ;;  %v2589_v54 = vand.u32 4294901760, %v83_v32  ;;  %v79_v55 = vld [vmem:[%s4090_s1 + $0x1b0] sm:$0xff]  ;;  %v2597_v56 = vsub.f32 %v85_v2, %v2558_v31  ;;  %v2599_v59 = vand.u32 4294901760, %v81_v42 }
  0x15   :  { %272 = vmatpush.msra.mxu2 %v2463_v35  ;;  %325 = vmatpush.msra.mxu3 %v2442_v28  ;;  %v202_v60 = vand.u32 4294901760, %v201_v36  ;;  %v213_v61 = vsub.f32 %v2534_v1, %v4095_v38  ;;  %v2607_v6 = vsub.f32 %v25_v7, %v2567_v37  ;;  %v4105_v2 = vand.u32 4294901760, %v2579_v44 }
  0x16   :  { %114 = vmatpush.msra.mxu0 %v2460_v34  ;;  %179 = vmatpush.msra.mxu1 %v178_v62  ;;  %v4102_v62 = vand.u32 4294901760, %v2571_v39  ;;  %v208_v36 = vand.u32 4294901760, %v207_v48  ;;  %v219_v7 = vsub.f32 %v2554_v26, %v4099_v49  ;;  %v4106_v38 = vand.u32 4294901760, %v2587_v50 }
  0x17   :  { %275 = vmatpush.msra.mxu2 %v2476_v41  ;;  %327 = vmatpush.msra.mxu3 %v2460_v34  ;;  %v2623_v18 = vsub.f32 %v83_v32, %v2589_v54  ;;  %v4109_v0 = vand.u32 4294901760, %v2597_v56  ;;  %v2629_v53 = vsub.f32 %v81_v42, %v2599_v59  ;;  %v214_v48 = vand.u32 4294901760, %v213_v61 }
  0x18   :  { %116 = vmatpush.msra.mxu0 %v2485_v45  ;;  %185 = vmatpush.msra.mxu1 %v184_v12  ;;  %v2612_v12 = vand.u32 4294901760, %v79_v55  ;;  %v225_v32 = vsub.f32 %v2571_v39, %v4102_v62  ;;  %v4110_v49 = vand.u32 4294901760, %v2607_v6  ;;  %v519_v42 = vsub.f32 %v2579_v44, %v4105_v2 }
  0x19   :  { %278 = vmatpush.msra.mxu2 %v2501_v52  ;;  %329 = vmatpush.msra.mxu3 %v2485_v45  ;;  %v220_v61 = vand.u32 4294901760, %v219_v7  ;;  %v231_v62 = vsub.f32 %v2587_v50, %v4106_v38  ;;  %v4111_v40 = vand.u32 4294901760, %v2623_v18  ;;  %vm1615_vm0 = vcmask 523264  }
  0x1a   :  { %118 = vmatpush.msra.mxu0 %v2498_v51  ;;  %191 = vmatpush.msra.mxu1 %v190_v30  ;;  %v77_v30 = vld [vmem:[%s4090_s1 + $0x1a0] sm:$0xff]  ;;  %v2647_v46 = vsub.f32 %v79_v55, %v2612_v12  ;;  %v525_v55 = vsub.f32 %v2597_v56, %v4109_v0  ;;  %v226_v7 = vand.u32 4294901760, %v225_v32  ;;  %v237_v38 = vsub.f32 %v2607_v6, %v4110_v49  ;;  %v67_v49 = vld [vmem:[%s4090_s1 + $0x150] sm:$0xff] }
  0x1b   :  { %281 = vmatpush.msra.mxu2 %v2516_v58  ;;  %331 = vmatpush.msra.mxu3 %v2498_v51  ;;  %v2639_v47 = vand.u32 4294901760, %v77_v30  ;;  %v520_v0 = vand.u32 4294901760, %v519_v42  ;;  %v232_v32 = vand.u32 4294901760, %v231_v62 }
  0x1c   :  { %120 = vmatpush.msra.mxu0 %v2513_v57  ;;  %197 = vmatpush.msra.mxu1 %v196_v43  ;;  %v75_v43 = vld [vmem:[%s4090_s1 + $0x190] sm:$0xff]  ;;  %v4112_v2 = vand.u32 4294901760, %v2647_v46  ;;  %v526_v42 = vand.u32 4294901760, %v525_v55  ;;  %v4147_v55 = vand.u32 4294901760, %v2414_v16  ;;  %v2722_v16 = vand.u32 4294901760, %v67_v49 }
  0x1d   :  { %284 = vmatpush.msra.mxu2 %v2534_v1  ;;  %333 = vmatpush.msra.mxu3 %v2513_v57  ;;  %v2657_v33 = vand.u32 4294901760, %v75_v43  ;;  %v2673_v27 = vsub.f32 %v77_v30, %v2639_v47  ;;  %v531_v30 = vsub.f32 %v2623_v18, %v4111_v40 }
  0x1e   :  { %122 = vmatpush.msra.mxu0 %v2530_v63  ;;  %203 = vmatpush.msra.mxu1 %v202_v60  ;;  %v73_v60 = vld [vmem:[%s4090_s1 + $0x180] sm:$0xff] }
  0x1f   :  { %287 = vmatpush.msra.mxu2 %v2554_v26  ;;  %335 = vmatpush.msra.mxu3 %v2530_v63  ;;  %v2675_v24 = vand.u32 4294901760, %v73_v60  ;;  %v2689_v14 = vsub.f32 %v75_v43, %v2657_v33  ;;  %v238_v43 = vand.u32 4294901760, %v237_v38  ;;  %v532_v38 = vand.u32 4294901760, %v531_v30 }
  0x20   :  { %124 = vmatpush.msra.mxu0 %v2550_v13  ;;  %209 = vmatpush.msra.mxu1 %v208_v36  ;;  %v71_v36 = vld [vmem:[%s4090_s1 + $0x170] sm:$0xff] }
  0x21   :  { %290 = vmatpush.msra.mxu2 %v2571_v39  ;;  %337 = vmatpush.msra.mxu3 %v2550_v13  ;;  %v2705_v15 = vsub.f32 %v73_v60, %v2675_v24 }
  0x22   :  { %126 = vmatpush.msra.mxu0 %v2567_v37  ;;  %215 = vmatpush.msra.mxu1 %v214_v48  ;;  %v69_v48 = vld [vmem:[%s4090_s1 + $0x160] sm:$0xff] }
  0x23   :  { %293 = vmatpush.msra.mxu2 %v2587_v50  ;;  %339 = vmatpush.msra.mxu3 %v2567_v37 }
  0x24   :  { %356 = vmatpush.msrb.mxu0 %v146_v22  ;;  %221 = vmatpush.msra.mxu1 %v220_v61  ;;  %v2691_v22 = vand.u32 4294901760, %v71_v36  ;;  %v4146_v61 = vand.u32 4294901760, %v2629_v53 }
  0x25   :  { %296 = vmatpush.msra.mxu2 %v2607_v6  ;;  %521 = vmatpush.msrb.mxu3 %v520_v0  ;;  %v4148_v0 = vand.u32 4294901760, %v2422_v19 }
  0x26   :  { %360 = vmatpush.msrb.mxu0 %v152_v23  ;;  %v537_v62 = vsub.f32 %v2629_v53, %v4146_v61  ;;  %227 = vmatpush.msra.mxu1 %v226_v7  ;;  %v2707_v23 = vand.u32 4294901760, %v69_v48  ;;  %v543_v61 = vsub.f32 %v2647_v46, %v4112_v2  ;;  %v65_v7 = vld [vmem:[%s4090_s1 + $0x140] sm:$0xff]  ;;  %v2720_v40 = vsub.f32 %v71_v36, %v2691_v22 }
  0x27   :  { %468 = vmatpush.msrb.mxu2 %v2547_v8  ;;  %527 = vmatpush.msrb.mxu3 %v526_v42  ;;  %v21_v2 = vld [vmem:[%s4089_s0] sm:$0xff]  ;;  %v2737_v19 = vand.u32 4294901760, %v65_v7  ;;  %v4150_v42 = vand.u32 4294901760, %v2425_v20  ;;  %v63_v20 = vld [vmem:[%s4090_s1 + $0x130] sm:$0xff] }
  0x28   :  { %364 = vmatpush.msrb.mxu0 %v4147_v55  ;;  %233 = vmatpush.msra.mxu1 %v232_v32  ;;  %v538_v55 = vand.u32 4294901760, %v537_v62  ;;  %v4149_v32 = vand.u32 4294901760, %v2673_v27  ;;  %v2735_v60 = vsub.f32 %v69_v48, %v2707_v23  ;;  %v544_v62 = vand.u32 4294901760, %v543_v61 }
  0x29   :  { %470 = vmatpush.msrb.mxu2 %v2558_v31  ;;  %533 = vmatpush.msrb.mxu3 %v532_v38  ;;  %v2748_v48 = vsub.f32 %v67_v49, %v2722_v16  ;;  %v2750_v36 = vand.u32 4294901760, %v21_v2  ;;  %v4153_v38 = vand.u32 4294901760, %v2705_v15 }
  0x2a   :  { %368 = vmatpush.msrb.mxu0 %v4148_v0  ;;  %239 = vmatpush.msra.mxu1 %v238_v43  ;;  %v549_v30 = vsub.f32 %v2673_v27, %v4149_v32  ;;  %v4151_v43 = vand.u32 4294901760, %v2689_v14  ;;  %v4113_v32 = vand.u32 4294901760, %v2720_v40 }
  0x2b   :  { %472 = vmatpush.msrb.mxu2 %v2589_v54  ;;  %539 = vmatpush.msrb.mxu3 %v538_v55  ;;  %v561_v49 = vsub.f32 %v2705_v15, %v4153_v38  ;;  %v2780_v38 = vsub.f32 %v21_v2, %v2750_v36 }
  0x2c   :  { %372 = vmatpush.msrb.mxu0 %v4150_v42  ;;  %427 = vmatpush.msrb.mxu1 %v2378_v3  ;;  %v555_v0 = vsub.f32 %v2689_v14, %v4151_v43  ;;  %v4152_v3 = vand.u32 4294901760, %v2435_v25  ;;  %v550_v61 = vand.u32 4294901760, %v549_v30  ;;  %v4115_v42 = vand.u32 4294901760, %v2735_v60  ;;  %v61_v25 = vld [vmem:[%s4090_s1 + $0x120] sm:$0xff] }
  0x2d   :  { %474 = vmatpush.msrb.mxu2 %v2599_v59  ;;  %v2764_v43 = vsub.f32 %v65_v7, %v2737_v19  ;;  %545 = vmatpush.msrb.mxu3 %v544_v62  ;;  %v567_v7 = vsub.f32 %v2720_v40, %v4113_v32  ;;  %v4114_v30 = vand.u32 4294901760, %v2748_v48  ;;  %v2788_v62 = vand.u32 4294901760, %v61_v25 }
  0x2e   :  { %376 = vmatpush.msrb.mxu0 %v4152_v3  ;;  %429 = vmatpush.msrb.mxu1 %v2380_v4  ;;  %v4154_v3 = vand.u32 4294901760, %v2445_v29  ;;  %v2772_v4 = vand.u32 4294901760, %v63_v20  ;;  %v556_v55 = vand.u32 4294901760, %v555_v0  ;;  %v59_v29 = vld [vmem:[%s4090_s1 + $0x110] sm:$0xff]  ;;  %v562_v0 = vand.u32 4294901760, %v561_v49 }
  0x2f   :  { %476 = vmatpush.msrb.mxu2 %v2612_v12  ;;  %551 = vmatpush.msrb.mxu3 %v550_v61  ;;  %v573_v2 = vsub.f32 %v2735_v60, %v4115_v42  ;;  %v4156_v32 = vand.u32 4294901760, %v2476_v41  ;;  %v57_v61 = vld [vmem:[%s4090_s1 + $0x100] sm:$0xff]  ;;  %v23_v49 = vld [vmem:[%s4089_s0 + $0x10] sm:$0xff]  ;;  %v568_v41 = vand.u32 4294901760, %v567_v7 }
  0x30   :  { %380 = vmatpush.msrb.mxu0 %v4154_v3  ;;  %431 = vmatpush.msrb.mxu1 %v2382_v5  ;;  %v4155_v5 = vand.u32 4294901760, %v2463_v35  ;;  %v584_v3 = vand.u32 4294901760, %v2764_v43  ;;  %v2799_v35 = vsub.f32 %v63_v20, %v2772_v4  ;;  %v4157_v20 = vand.u32 4294901760, %v2501_v52 }
  0x31   :  { %478 = vmatpush.msrb.mxu2 %v2639_v47  ;;  %557 = vmatpush.msrb.mxu3 %v556_v55  ;;  %v574_v55 = vand.u32 4294901760, %v573_v2  ;;  %v2828_v42 = vand.u32 4294901760, %v23_v49  ;;  %v4159_v52 = vand.u32 4294901760, %v2516_v58 }
  0x32   :  { %384 = vmatpush.msrb.mxu0 %v4155_v5  ;;  %433 = vmatpush.msrb.mxu1 %v2393_v9  ;;  %v2801_v9 = vand.u32 4294901760, %v59_v29  ;;  %v2820_v5 = vsub.f32 %v61_v25, %v2788_v62  ;;  %v585_v7 = vsub.f32 %v2764_v43, %v584_v3 }
  0x33   :  { %480 = vmatpush.msrb.mxu2 %v2657_v33  ;;  %563 = vmatpush.msrb.mxu3 %v562_v0  ;;  %4158 = vst [vmem:[#allocation5_spill] sm:$0xff] %v2828_v42 }
  0x34   :  { %388 = vmatpush.msrb.mxu0 %v4156_v32  ;;  %435 = vmatpush.msrb.mxu1 %v2395_v10  ;;  %v579_v10 = vsub.f32 %v2748_v48, %v4114_v30  ;;  %v2814_v32 = vand.u32 4294901760, %v2780_v38  ;;  %v2826_v30 = vand.u32 4294901760, %v57_v61  ;;  %v2835_v25 = vsub.f32 %v59_v29, %v2801_v9 }
  0x35   :  { %482 = vmatpush.msrb.mxu2 %v2675_v24  ;;  %569 = vmatpush.msrb.mxu3 %v568_v41  ;;  %v596_v58 = vand.u32 4294901760, %v2820_v5  ;;  %v2846_v29 = vsub.f32 %v23_v49, %v2828_v42 }
  0x36   :  { %392 = vmatpush.msrb.mxu0 %v4157_v20  ;;  %437 = vmatpush.msrb.mxu1 %v2397_v11  ;;  %v590_v11 = vand.u32 4294901760, %v2799_v35  ;;  %v580_v0 = vand.u32 4294901760, %v579_v10  ;;  %v130_v2 = vsub.f32 %v2780_v38, %v2814_v32  ;;  %v4160_v20 = vand.u32 4294901760, %v2534_v1 }
  0x37   :  { %484 = vmatpush.msrb.mxu2 %v2691_v22  ;;  %575 = vmatpush.msrb.mxu3 %v574_v55  ;;  %4161 = vst [vmem:[#allocation6_spill] sm:$0xff] %v2846_v29  ;;  %v2849_v41 = vsub.f32 %v57_v61, %v2826_v30  ;;  %v4162_v10 = vand.u32 4294901760, %v2554_v26  ;;  %v602_v1 = vand.u32 4294901760, %v2835_v25  ;;  %v22_v55 = vld [vmem:[%s4089_s0 + $0x8] sm:$0xff]  ;;  %v4163_v26 = vand.u32 4294901760, %v2571_v39 }
  0x38   :  { %396 = vmatpush.msrb.mxu0 %v4159_v52  ;;  %439 = vmatpush.msrb.mxu1 %v2416_v17  ;;  %v586_v17 = vand.u32 4294901760, %v585_v7  ;;  %v2862_v61 = vand.u32 4294901760, %v130_v2  ;;  %v2873_v7 = vand.u32 4294901760, %v2846_v29  ;;  %v2875_v52 = vand.u32 4294901760, %v22_v55 }
  0x39   :  { %486 = vmatpush.msrb.mxu2 %v2707_v23  ;;  %581 = vmatpush.msrb.mxu3 %v580_v0  ;;  %v608_v49 = vand.u32 4294901760, %v2849_v41  ;;  %v4166_v0 = vand.u32 4294901760, %v2587_v50  ;;  %v603_v39 = vsub.f32 %v2835_v25, %v602_v1  ;;  %v4167_v2 = vand.u32 4294901760, %v2607_v6 }
  0x3a   :  { %400 = vmatpush.msrb.mxu0 %v4160_v20  ;;  %441 = vmatpush.msrb.mxu1 %v2427_v21  ;;  %v591_v21 = vsub.f32 %v2799_v35, %v590_v11  ;;  %4164 = vst [vmem:[#allocation7_spill] sm:$0xff] %v2873_v7  ;;  %v138_v50 = vsub.f32 %v2846_v29, %v2873_v7 }
  0x3b   :  { %488 = vmatpush.msrb.mxu2 %v2722_v16  ;;  %587 = vmatpush.msrb.mxu3 %v586_v17  ;;  %4165 = vst [vmem:[#allocation8_spill] sm:$0xff] %v2875_v52  ;;  %v2896_v17 = vsub.f32 %v22_v55, %v2875_v52  ;;  %v604_v6 = vand.u32 4294901760, %v603_v39  ;;  %v4172_v55 = vand.u32 4294901760, %v2597_v56 }
  0x3c   :  { %404 = vmatpush.msrb.mxu0 %v4162_v10  ;;  %443 = vmatpush.msrb.mxu1 %v2442_v28  ;;  %v597_v28 = vsub.f32 %v2820_v5, %v596_v58  ;;  %v2904_v10 = vand.u32 4294901760, %v138_v50  ;;  %v38_v50 = vld [vmem:[%s4090_s1 + $0x68] sm:$0xff] }
  0x3d   :  { %490 = vmatpush.msrb.mxu2 %v2737_v19  ;;  %132 = vmatmul.f32.vlgmr.msra.gmra.mxu0 %v2862_v61  ;;  %4168 = vst [vmem:[#allocation9_spill] sm:$0xff] %v2896_v17 }
  0x3e   :  { %408 = vmatpush.msrb.mxu0 %v4163_v26  ;;  %445 = vmatpush.msrb.mxu1 %v2460_v34  ;;  %v592_v34 = vand.u32 4294901760, %v591_v21  ;;  %v598_v20 = vand.u32 4294901760, %v597_v28  ;;  %4169 = vst [vmem:[#allocation10_spill] sm:$0xff] %v2904_v10  ;;  %v2907_v21 = vand.u32 4294901760, %v2896_v17 }
  0x3f   :  { %299 = vmatmul.f32.vlgmr.msra.gmra.mxu2 %v2780_v38  ;;  %343 = vmatmul.f32.vlgmr.msra.gmra.mxu3 %v2814_v32 }
  0x40   :  { %412 = vmatpush.msrb.mxu0 %v4166_v0  ;;  %447 = vmatpush.msrb.mxu1 %v2485_v45  ;;  %v609_v45 = vsub.f32 %v2849_v41, %v608_v49  ;;  %4170 = vst [vmem:[#allocation11_spill] sm:$0xff] %v2907_v21 }
  0x41   :  { %492 = vmatpush.msrb.mxu2 %v2772_v4  ;;  %593 = vmatpush.msrb.mxu3 %v592_v34 }
  0x42   :  { %416 = vmatpush.msrb.mxu0 %v4167_v2  ;;  %449 = vmatpush.msrb.mxu1 %v2498_v51  ;;  %v610_v51 = vand.u32 4294901760, %v609_v45  ;;  %v40_v2 = vld [vmem:[%s4090_s1 + $0x78] sm:$0xff] }
  0x43   :  { %494 = vmatpush.msrb.mxu2 %v2788_v62  ;;  %241 = vmatmul.f32.vlgmr.msra.gmra.mxu1 %v2750_v36 }
  0x44   :  { %623 = vmatpush.msra.mxu0 %v2579_v44  ;;  %451 = vmatpush.msrb.mxu1 %v2513_v57  ;;  %v4171_v57 = vand.u32 4294901760, %v2579_v44  ;;  %v4173_v44 = vand.u32 4294901760, %v2623_v18 }
  0x45   :  { %496 = vmatpush.msrb.mxu2 %v2801_v9  ;;  %599 = vmatpush.msrb.mxu3 %v598_v20 }
  0x46   :  { %626 = vmatpush.msra.mxu0 %v2597_v56  ;;  %453 = vmatpush.msrb.mxu1 %v2530_v63  ;;  %v502_v63 = vsub.f32 %v2896_v17, %v2907_v21 }
  0x47   :  { %498 = vmatpush.msrb.mxu2 %v2826_v30  ;;  %605 = vmatpush.msrb.mxu3 %v604_v6 }
  0x48   :  { %304 = vmatmul.f32.gmra.mxu2 %v2846_v29  ;;  %629 = vmatpush.msra.mxu0 %v2623_v18  ;;  %v2931_v26 = vand.u32 4294901760, %v502_v63  ;;  %v4179_v18 = vand.u32 4294901760, %v2673_v27  ;;  %v70_v29 = vld [vmem:[%s4090_s1 + $0x168] sm:$0xff] }
  0x49   :  { %728 = vmatpush.msra.mxu2 %v4171_v57  ;;  %455 = vmatpush.msrb.mxu1 %v2550_v13  ;;  %v24_v13 = vld [vmem:[%s4089_s0 + $0x18] sm:$0xff]  ;;  %v3108_v57 = vand.u32 4294901760, %v40_v2 }
  0x4a   :  { %611 = vmatpush.msrb.mxu3 %v610_v51  ;;  %140 = vmatmul.f32.gmra.mxu0 %v2904_v10  ;;  %4174 = vst [vmem:[#allocation12_spill] sm:$0xff] %v2931_v26  ;;  %v2938_v56 = vand.u32 4294901760, %v24_v13 }
  0x4b   :  { %349 = vmatmul.f32.gmra.mxu3 %v2873_v7  ;;  %632 = vmatpush.msra.mxu0 %v2629_v53  ;;  %v72_v7 = vld [vmem:[%s4090_s1 + $0x178] sm:$0xff] }
  0x4c   :  { %732 = vmatpush.msra.mxu2 %v4172_v55  ;;  %799 = vmatpush.msra.mxu3 %v2547_v8  ;;  %4176 = vst [vmem:[#allocation13_spill] sm:$0xff] %v2938_v56 }
  0x4d   :  { %457 = vmatpush.msrb.mxu1 %v2567_v37  ;;  %635 = vmatpush.msra.mxu0 %v2647_v46  ;;  %v4175_v37 = vand.u32 4294901760, %v2629_v53  ;;  %v2950_v53 = vsub.f32 %v24_v13, %v2938_v56  ;;  %v3115_v13 = vand.u32 4294901760, %v38_v50 }
  0x4e   :  { %245 = vmatmul.f32.gmra.mxu1 %v2828_v42  ;;  %736 = vmatpush.msra.mxu2 %v4173_v44 }
  0x4f   :  { %681 = vmatpush.msra.mxu1 %v2547_v8  ;;  %801 = vmatpush.msra.mxu3 %v2558_v31  ;;  %v4177_v8 = vand.u32 4294901760, %v2647_v46  ;;  %4178 = vst [vmem:[#allocation14_spill] sm:$0xff] %v2950_v53  ;;  %v2962_v46 = vand.u32 4294901760, %v2950_v53 }
  0x50   :  { %638 = vmatpush.msra.mxu0 %v2673_v27  ;;  %740 = vmatpush.msra.mxu2 %v4175_v37  ;;  %v4182_v27 = vand.u32 4294901760, %v2705_v15  ;;  %v36_v37 = vld [vmem:[%s4090_s1 + $0x58] sm:$0xff] }
  0x51   :  { %683 = vmatpush.msra.mxu1 %v2558_v31  ;;  %803 = vmatpush.msra.mxu3 %v2589_v54  ;;  %4180 = vst [vmem:[#allocation15_spill] sm:$0xff] %v2962_v46  ;;  %v4181_v31 = vand.u32 4294901760, %v2689_v14 }
  0x52   :  { %504 = vmatmul.f32.vlgmr.msrb.gmra.mxu2 %v2931_v26  ;;  %641 = vmatpush.msra.mxu0 %v2689_v14 }
  0x53   :  { %685 = vmatpush.msra.mxu1 %v2589_v54  ;;  %744 = vmatpush.msra.mxu2 %v4177_v8  ;;  %v510_v54 = vsub.f32 %v2950_v53, %v2962_v46 }
  0x54   :  { %805 = vmatpush.msra.mxu3 %v2599_v59  ;;  %418 = vmatmul.f32.vlgmr.msrb.gmra.mxu0 %v2750_v36 }
  0x55   :  { %613 = vmatmul.f32.vlgmr.msrb.gmra.mxu3 %v2875_v52  ;;  %644 = vmatpush.msra.mxu0 %v2705_v15 }
  0x56   :  { %687 = vmatpush.msra.mxu1 %v2599_v59  ;;  %748 = vmatpush.msra.mxu2 %v4179_v18  ;;  %v4183_v59 = vand.u32 4294901760, %v2720_v40 }
  0x57   :  { %807 = vmatpush.msra.mxu3 %v2612_v12  ;;  %459 = vmatmul.f32.vlgmr.msrb.gmra.mxu1 %v2750_v36 }
  0x58   :  { %647 = vmatpush.msra.mxu0 %v2720_v40  ;;  %689 = vmatpush.msra.mxu1 %v2612_v12  ;;  %v4184_v12 = vand.u32 4294901760, %v2735_v60  ;;  %v54_v40 = vld [vmem:[%s4090_s1 + $0xe8] sm:$0xff] }
  0x59   :  { %752 = vmatpush.msra.mxu2 %v4181_v31  ;;  %809 = vmatpush.msra.mxu3 %v2639_v47  ;;  %v3007_v15 = vand.u32 4294901760, %v54_v40 }
  0x5a   :  { %650 = vmatpush.msra.mxu0 %v2735_v60  ;;  %691 = vmatpush.msra.mxu1 %v2639_v47  ;;  %v56_v47 = vld [vmem:[%s4090_s1 + $0xf8] sm:$0xff] }
  0x5b   :  { %756 = vmatpush.msra.mxu2 %v4182_v27  ;;  %811 = vmatpush.msra.mxu3 %v2657_v33  ;;  %v2997_v14 = vand.u32 4294901760, %v56_v47  ;;  %v34_v27 = vld [vmem:[%s4090_s1 + $0x48] sm:$0xff] }
  0x5c   :  { %653 = vmatpush.msra.mxu0 %v2748_v48  ;;  %693 = vmatpush.msra.mxu1 %v2657_v33  ;;  %v2989_v33 = vand.u32 4294901760, %v510_v54  ;;  %v3138_v54 = vand.u32 4294901760, %v36_v37 }
  0x5d   :  { %760 = vmatpush.msra.mxu2 %v4183_v59  ;;  %813 = vmatpush.msra.mxu3 %v2675_v24  ;;  %v3016_v60 = vsub.f32 %v56_v47, %v2997_v14  ;;  %v3142_v47 = vsub.f32 %v40_v2, %v3108_v57 }
  0x5e   :  { %656 = vmatpush.msra.mxu0 %v2764_v43  ;;  %695 = vmatpush.msra.mxu1 %v2675_v24  ;;  %4185 = vst [vmem:[#allocation16_spill] sm:$0xff] %v2989_v33  ;;  %v4186_v24 = vand.u32 4294901760, %v2748_v48  ;;  %v50_v48 = vld [vmem:[%s4090_s1 + $0xc8] sm:$0xff]  ;;  %v48_v43 = vld [vmem:[%s4090_s1 + $0xb8] sm:$0xff]  ;;  %v3172_v2 = vsub.f32 %v36_v37, %v3138_v54 }
  0x5f   :  { %764 = vmatpush.msra.mxu2 %v4184_v12  ;;  %815 = vmatpush.msra.mxu3 %v2691_v22  ;;  %v28_v37 = vld [vmem:[%s4090_s1 + $0x18] sm:$0xff] }
  0x60   :  { %422 = vmatmul.f32.gmra.mxu0 %v2828_v42  ;;  %697 = vmatpush.msra.mxu1 %v2691_v22  ;;  %v52_v22 = vld [vmem:[%s4090_s1 + $0xd8] sm:$0xff] }
  0x61   :  { %659 = vmatpush.msra.mxu0 %v2799_v35  ;;  %768 = vmatpush.msra.mxu2 %v4186_v24  ;;  %v3039_v35 = vand.u32 4294901760, %v48_v43  ;;  %v32_v24 = vld [vmem:[%s4090_s1 + $0x38] sm:$0xff] }
  0x62   :  { %817 = vmatpush.msra.mxu3 %v2707_v23  ;;  %699 = vmatpush.msra.mxu1 %v2707_v23  ;;  %v3013_v23 = vand.u32 4294901760, %v52_v22 }
  0x63   :  { %662 = vmatpush.msra.mxu0 %v2820_v5  ;;  %772 = vmatpush.msra.mxu2 %v584_v3  ;;  %v3035_v3 = vand.u32 4294901760, %v50_v48 }
  0x64   :  { %819 = vmatpush.msra.mxu3 %v2722_v16  ;;  %512 = vmatmul.f32.gmra.mxu2 %v2989_v33  ;;  %v3043_v28 = vsub.f32 %v52_v22, %v3013_v23 }
  0x65   :  { %665 = vmatpush.msra.mxu0 %v2835_v25  ;;  %701 = vmatpush.msra.mxu1 %v2722_v16  ;;  %v3030_v16 = vsub.f32 %v54_v40, %v3007_v15  ;;  %v3062_v34 = vsub.f32 %v50_v48, %v3035_v3  ;;  %v3147_v40 = vsub.f32 %v38_v50, %v3115_v13 }
  0x66   :  { %776 = vmatpush.msra.mxu2 %v590_v11  ;;  %821 = vmatpush.msra.mxu3 %v2737_v19  ;;  %v4126_v11 = vand.u32 4294901760, %v3016_v60 }
  0x67   :  { %617 = vmatmul.f32.gmra.mxu3 %v2938_v56  ;;  %668 = vmatpush.msra.mxu0 %v2849_v41  ;;  %v4124_v5 = vand.u32 4294901760, %v3030_v16  ;;  %v4122_v20 = vand.u32 4294901760, %v3062_v34 }
  0x68   :  { %703 = vmatpush.msra.mxu1 %v2737_v19  ;;  %780 = vmatpush.msra.mxu2 %v596_v58  ;;  %v46_v19 = vld [vmem:[%s4090_s1 + $0xa8] sm:$0xff]  ;;  %v44_v58 = vld [vmem:[%s4090_s1 + $0x98] sm:$0xff]  ;;  %v891_v25 = vsub.f32 %v3016_v60, %v4126_v11 }
  0x69   :  { %823 = vmatpush.msra.mxu3 %v2772_v4  ;;  %463 = vmatmul.f32.gmra.mxu1 %v2828_v42  ;;  %v3059_v0 = vand.u32 4294901760, %v46_v19  ;;  %v3079_v39 = vand.u32 4294901760, %v44_v58  ;;  %v897_v41 = vsub.f32 %v3030_v16, %v4124_v5 }
  0x6a   :  { %671 = vmatmul.f32.vlgmr.msra.gmra.mxu0 %v2896_v17  ;;  %705 = vmatpush.msra.mxu1 %v2772_v4  ;;  %v42_v4 = vld [vmem:[%s4090_s1 + $0x88] sm:$0xff]  ;;  %v892_v6 = vand.u32 4294901760, %v891_v25  ;;  %v3168_v25 = vand.u32 4294901760, %v32_v24 }
  0x6b   :  { %840 = vmatpush.msrb.mxu0 %v2997_v14  ;;  %784 = vmatpush.msra.mxu2 %v602_v1  ;;  %v3075_v1 = vsub.f32 %v48_v43, %v3039_v35  ;;  %v3095_v45 = vsub.f32 %v46_v19, %v3059_v0  ;;  %v3111_v63 = vsub.f32 %v44_v58, %v3079_v39  ;;  %v898_v55 = vand.u32 4294901760, %v897_v41  ;;  %v30_v58 = vld [vmem:[%s4090_s1 + $0x28] sm:$0xff] }
  0x6c   :  { %825 = vmatpush.msra.mxu3 %v2788_v62  ;;  %707 = vmatpush.msra.mxu1 %v2788_v62  ;;  %v4123_v62 = vand.u32 4294901760, %v3043_v28  ;;  %v3157_v43 = vand.u32 4294901760, %v34_v27  ;;  %v4119_v41 = vand.u32 4294901760, %v3142_v47  ;;  %v78_v17 = vld [vmem:[%s4090_s1 + $0x1a8] sm:$0xff] }
  0x6d   :  { %842 = vmatpush.msrb.mxu0 %v3007_v15  ;;  %788 = vmatpush.msra.mxu2 %v608_v49  ;;  %v3086_v49 = vand.u32 4294901760, %v42_v4  ;;  %v4120_v51 = vand.u32 4294901760, %v3075_v1  ;;  %v4118_v8 = vand.u32 4294901760, %v3095_v45  ;;  %v4117_v59 = vand.u32 4294901760, %v3111_v63 }
  0x6e   :  { %827 = vmatpush.msra.mxu3 %v2801_v9  ;;  %790 = vmatmul.f32.vlgmr.msra.gmra.mxu2 %v2875_v52  ;;  %v3303_v33 = vand.u32 4294901760, %v78_v17 }
  0x6f   :  { %844 = vmatpush.msrb.mxu0 %v3013_v23  ;;  %995 = vmatpush.msrb.mxu2 %v3016_v60  ;;  %v3118_v44 = vsub.f32 %v42_v4, %v3086_v49  ;;  %v915_v31 = vsub.f32 %v3075_v1, %v4120_v51  ;;  %v921_v48 = vsub.f32 %v3095_v45, %v4118_v8 }
  0x70   :  { %709 = vmatpush.msra.mxu1 %v2801_v9  ;;  %829 = vmatpush.msra.mxu3 %v2826_v30  ;;  %v903_v9 = vsub.f32 %v3043_v28, %v4123_v62  ;;  %v927_v4 = vsub.f32 %v3111_v63, %v4117_v59  ;;  %v3335_v10 = vsub.f32 %v78_v17, %v3303_v33 }
  0x71   :  { %831 = vmatmul.f32.vlgmr.msra.gmra.mxu3 %v2875_v52  ;;  %846 = vmatpush.msrb.mxu0 %v3035_v3  ;;  %v4116_v12 = vand.u32 4294901760, %v3118_v44  ;;  %v916_v19 = vand.u32 4294901760, %v915_v31  ;;  %v88_v31 = vld [vmem:[%s4090_s1 + $0x1f8] sm:$0xff] }
  0x72   :  { %998 = vmatpush.msrb.mxu2 %v3030_v16  ;;  %1053 = vmatpush.msrb.mxu3 %v2997_v14  ;;  %v904_v18 = vand.u32 4294901760, %v903_v9  ;;  %v922_v9 = vand.u32 4294901760, %v921_v48  ;;  %v4125_v48 = vand.u32 4294901760, %v3172_v2 }
  0x73   :  { %711 = vmatpush.msra.mxu1 %v2826_v30  ;;  %848 = vmatpush.msrb.mxu0 %v3039_v35  ;;  %v909_v30 = vsub.f32 %v3062_v34, %v4122_v20  ;;  %v933_v50 = vsub.f32 %v3118_v44, %v4116_v12  ;;  %v3203_v12 = vsub.f32 %v32_v24, %v3168_v25 }
  0x74   :  { %715 = vmatmul.f32.vlgmr.msra.gmra.mxu1 %v2907_v21  ;;  %1001 = vmatpush.msrb.mxu2 %v3043_v28  ;;  %v76_v21 = vld [vmem:[%s4090_s1 + $0x198] sm:$0xff] }
  0x75   :  { %893 = vmatpush.msrb.mxu1 %v892_v6  ;;  %1055 = vmatpush.msrb.mxu3 %v3007_v15  ;;  %v910_v22 = vand.u32 4294901760, %v909_v30  ;;  %v4121_v6 = vand.u32 4294901760, %v3147_v40  ;;  %v3184_v30 = vsub.f32 %v34_v27, %v3157_v43  ;;  %v928_v27 = vand.u32 4294901760, %v927_v4  ;;  %v86_v4 = vld [vmem:[%s4090_s1 + $0x1e8] sm:$0xff] }
  0x76   :  { %850 = vmatpush.msrb.mxu0 %v3059_v0  ;;  %1004 = vmatpush.msrb.mxu2 %v3062_v34  ;;  %v934_v59 = vand.u32 4294901760, %v933_v50  ;;  %v3222_v50 = vand.u32 4294901760, %v88_v31  ;;  %v3231_v62 = vand.u32 4294901760, %v86_v4 }
  0x77   :  { %899 = vmatpush.msrb.mxu1 %v898_v55  ;;  %1057 = vmatpush.msrb.mxu3 %v3013_v23  ;;  %v3181_v55 = vand.u32 4294901760, %v30_v58  ;;  %v945_v8 = vsub.f32 %v3147_v40, %v4121_v6 }
  0x78   :  { %794 = vmatmul.f32.gmra.mxu2 %v2938_v56  ;;  %852 = vmatpush.msrb.mxu0 %v3079_v39  ;;  %v3250_v20 = vsub.f32 %v88_v31, %v3222_v50  ;;  %v3264_v31 = vsub.f32 %v86_v4, %v3231_v62 }
  0x79   :  { %905 = vmatpush.msrb.mxu1 %v904_v18  ;;  %1007 = vmatpush.msrb.mxu2 %v3075_v1  ;;  %v26_v18 = vld [vmem:[%s4090_s1 + $0x8] sm:$0xff]  ;;  %v3220_v51 = vsub.f32 %v30_v58, %v3181_v55  ;;  %v84_v58 = vld [vmem:[%s4090_s1 + $0x1d8] sm:$0xff]  ;;  %v946_v5 = vand.u32 4294901760, %v945_v8 }
  0x7a   :  { %1059 = vmatpush.msrb.mxu3 %v3035_v3  ;;  %676 = vmatmul.f32.gmra.mxu0 %v2950_v53  ;;  %v3216_v24 = vand.u32 4294901760, %v26_v18  ;;  %v82_v8 = vld [vmem:[%s4090_s1 + $0x1c8] sm:$0xff] }
  0x7b   :  { %835 = vmatmul.f32.gmra.mxu3 %v2938_v56  ;;  %854 = vmatpush.msrb.mxu0 %v3086_v49  ;;  %v3272_v53 = vand.u32 4294901760, %v82_v8 }
  0x7c   :  { %911 = vmatpush.msrb.mxu1 %v910_v22  ;;  %1010 = vmatpush.msrb.mxu2 %v3095_v45  ;;  %v939_v22 = vsub.f32 %v3142_v47, %v4119_v41  ;;  %4188 = vst [vmem:[#allocation18_spill] sm:$0xff] %v3216_v24  ;;  %v4127_v41 = vand.u32 4294901760, %v3184_v30  ;;  %v3247_v11 = vsub.f32 %v26_v18, %v3216_v24  ;;  %v4189_v18 = vand.u32 4294901760, %v3203_v12 }
  0x7d   :  { %1061 = vmatpush.msrb.mxu3 %v3039_v35  ;;  %721 = vmatmul.f32.gmra.mxu1 %v2962_v46  ;;  %v3301_v56 = vsub.f32 %v82_v8, %v3272_v53 }
  0x7e   :  { %856 = vmatpush.msrb.mxu0 %v3108_v57  ;;  %917 = vmatpush.msrb.mxu1 %v916_v19  ;;  %v3210_v19 = vand.u32 4294901760, %v28_v37  ;;  %v940_v6 = vand.u32 4294901760, %v939_v22  ;;  %v957_v22 = vsub.f32 %v3184_v30, %v4127_v41  ;;  %v963_v41 = vsub.f32 %v3203_v12, %v4189_v18 }
  0x7f   :  { %1013 = vmatpush.msrb.mxu2 %v3111_v63  ;;  %1063 = vmatpush.msrb.mxu3 %v3059_v0  ;;  %v4193_v52 = vand.u32 4294901760, %v3247_v11 }
  0x80   :  { %4187 = vst [vmem:[#allocation17_spill] sm:$0xff] %v3210_v19  ;;  %858 = vmatpush.msrb.mxu0 %v3115_v13  ;;  %923 = vmatpush.msrb.mxu1 %v922_v9  ;;  %v951_v9 = vsub.f32 %v3172_v2, %v4125_v48  ;;  %v80_v48 = vld [vmem:[%s4090_s1 + $0x1b8] sm:$0xff] }
  0x81   :  { %1016 = vmatpush.msrb.mxu2 %v3118_v44  ;;  %1065 = vmatpush.msrb.mxu3 %v3079_v39  ;;  %v981_v26 = vsub.f32 %v3247_v11, %v4193_v52  ;;  %v4195_v52 = vand.u32 4294901760, %v3264_v31 }
  0x82   :  { %860 = vmatpush.msrb.mxu0 %v3138_v54  ;;  %929 = vmatpush.msrb.mxu1 %v928_v27  ;;  %v3239_v27 = vsub.f32 %v28_v37, %v3210_v19  ;;  %v952_v37 = vand.u32 4294901760, %v951_v9  ;;  %v4190_v9 = vand.u32 4294901760, %v3220_v51 }
  0x83   :  { %1019 = vmatpush.msrb.mxu2 %v3142_v47  ;;  %1067 = vmatpush.msrb.mxu3 %v3086_v49  ;;  %v1269_v42 = vsub.f32 %v3264_v31, %v4195_v52  ;;  %v982_v52 = vand.u32 4294901760, %v981_v26  ;;  %v4198_v26 = vand.u32 4294901760, %v3043_v28  ;;  %v68_v28 = vld [vmem:[%s4090_s1 + $0x158] sm:$0xff] }
  0x84   :  { %862 = vmatpush.msrb.mxu0 %v3157_v43  ;;  %935 = vmatpush.msrb.mxu1 %v934_v59  ;;  %v3257_v59 = vand.u32 4294901760, %v84_v58  ;;  %v969_v4 = vsub.f32 %v3220_v51, %v4190_v9  ;;  %v4191_v18 = vand.u32 4294901760, %v3239_v27 }
  0x85   :  { %1022 = vmatpush.msrb.mxu2 %v3147_v40  ;;  %1069 = vmatpush.msrb.mxu3 %v3108_v57 }
  0x86   :  { %864 = vmatpush.msrb.mxu0 %v3168_v25  ;;  %941 = vmatpush.msrb.mxu1 %v940_v6  ;;  %v958_v6 = vand.u32 4294901760, %v957_v22  ;;  %v3286_v46 = vsub.f32 %v84_v58, %v3257_v59  ;;  %v964_v22 = vand.u32 4294901760, %v963_v41  ;;  %v975_v58 = vsub.f32 %v3239_v27, %v4191_v18  ;;  %v74_v18 = vld [vmem:[%s4090_s1 + $0x188] sm:$0xff] }
  0x87   :  { %1025 = vmatpush.msrb.mxu2 %v3172_v2  ;;  %1071 = vmatpush.msrb.mxu3 %v3115_v13  ;;  %v970_v41 = vand.u32 4294901760, %v969_v4  ;;  %v3321_v4 = vand.u32 4294901760, %v76_v21 }
  0x88   :  { %866 = vmatpush.msrb.mxu0 %v3181_v55  ;;  %947 = vmatpush.msrb.mxu1 %v946_v5  ;;  %v3288_v5 = vand.u32 4294901760, %v80_v48 }
  0x89   :  { %1028 = vmatpush.msrb.mxu2 %v3184_v30  ;;  %1073 = vmatpush.msrb.mxu3 %v3138_v54 }
  0x8a   :  { %868 = vmatpush.msrb.mxu0 %v3210_v19  ;;  %953 = vmatpush.msrb.mxu1 %v952_v37  ;;  %v4192_v37 = vand.u32 4294901760, %v3250_v20 }
  0x8b   :  { %1031 = vmatpush.msrb.mxu2 %v3203_v12  ;;  %1075 = vmatpush.msrb.mxu3 %v3157_v43 }
  0x8c   :  { %870 = vmatpush.msrb.mxu0 %v3216_v24  ;;  %959 = vmatpush.msrb.mxu1 %v958_v6  ;;  %v1263_v9 = vsub.f32 %v3250_v20, %v4192_v37  ;;  %v3319_v6 = vsub.f32 %v80_v48, %v3288_v5  ;;  %v4194_v37 = vand.u32 4294901760, %v3016_v60  ;;  %v976_v48 = vand.u32 4294901760, %v975_v58 }
  0x8d   :  { %1034 = vmatpush.msrb.mxu2 %v3220_v51  ;;  %1077 = vmatpush.msrb.mxu3 %v3168_v25  ;;  %v3337_v60 = vand.u32 4294901760, %v74_v18  ;;  %v4197_v58 = vand.u32 4294901760, %v3286_v46 }
  0x8e   :  { %1100 = vmatpush.msra.mxu0 %v4194_v37  ;;  %965 = vmatpush.msrb.mxu1 %v964_v22  ;;  %v4196_v22 = vand.u32 4294901760, %v3030_v16  ;;  %v1264_v37 = vand.u32 4294901760, %v1263_v9  ;;  %v3351_v16 = vsub.f32 %v76_v21, %v3321_v4  ;;  %v1270_v9 = vand.u32 4294901760, %v1269_v42 }
  0x8f   :  { %1037 = vmatpush.msrb.mxu2 %v3239_v27  ;;  %1079 = vmatpush.msrb.mxu3 %v3181_v55  ;;  %v1275_v17 = vsub.f32 %v3286_v46, %v4197_v58  ;;  %v3364_v21 = vsub.f32 %v74_v18, %v3337_v60  ;;  %v4200_v42 = vand.u32 4294901760, %v3062_v34  ;;  %v3384_v34 = vand.u32 4294901760, %v68_v28 }
  0x90   :  { %1104 = vmatpush.msra.mxu0 %v4196_v22  ;;  %971 = vmatpush.msrb.mxu1 %v970_v41  ;;  %v3353_v41 = vand.u32 4294901760, %v72_v7  ;;  %v4199_v22 = vand.u32 4294901760, %v3301_v56  ;;  %v1298_v18 = vand.u32 4294901760, %v3351_v16 }
  0x91   :  { %1040 = vmatpush.msrb.mxu2 %v3247_v11  ;;  %1081 = vmatpush.msrb.mxu3 %v3210_v19  ;;  %v3366_v19 = vand.u32 4294901760, %v70_v29 }
  0x92   :  { %1108 = vmatpush.msra.mxu0 %v4198_v26  ;;  %977 = vmatpush.msrb.mxu1 %v976_v48  ;;  %v1281_v58 = vsub.f32 %v3301_v56, %v4199_v22  ;;  %v1276_v48 = vand.u32 4294901760, %v1275_v17  ;;  %v4201_v26 = vand.u32 4294901760, %v3319_v6  ;;  %v3379_v8 = vsub.f32 %v72_v7, %v3353_v41 }
  0x93   :  { %1212 = vmatpush.msra.mxu2 %v3222_v50  ;;  %1083 = vmatpush.msrb.mxu3 %v3216_v24  ;;  %v4202_v24 = vand.u32 4294901760, %v3075_v1  ;;  %v4203_v17 = vand.u32 4294901760, %v3335_v10  ;;  %v3395_v1 = vsub.f32 %v70_v29, %v3366_v19 }
  0x94   :  { %1112 = vmatpush.msra.mxu0 %v4200_v42  ;;  %983 = vmatpush.msrb.mxu1 %v982_v52  ;;  %v1287_v22 = vsub.f32 %v3319_v6, %v4201_v26  ;;  %v1282_v52 = vand.u32 4294901760, %v1281_v58  ;;  %v1304_v42 = vand.u32 4294901760, %v3364_v21  ;;  %v1299_v58 = vsub.f32 %v3351_v16, %v1298_v18 }
  0x95   :  { %1214 = vmatpush.msra.mxu2 %v3231_v62  ;;  %1265 = vmatpush.msra.mxu3 %v1264_v37  ;;  %v66_v37 = vld [vmem:[%s4090_s1 + $0x148] sm:$0xff]  ;;  %v1293_v7 = vsub.f32 %v3335_v10, %v4203_v17  ;;  %v4145_v29 = vand.u32 4294901760, %v3379_v8 }
  0x96   :  { %1116 = vmatpush.msra.mxu0 %v4202_v24  ;;  %1171 = vmatpush.msra.mxu1 %v2997_v14  ;;  %v4204_v14 = vand.u32 4294901760, %v3095_v45  ;;  %v64_v24 = vld [vmem:[%s4090_s1 + $0x138] sm:$0xff]  ;;  %v3408_v26 = vand.u32 4294901760, %v66_v37  ;;  %v4205_v45 = vand.u32 4294901760, %v3111_v63  ;;  %v1305_v17 = vsub.f32 %v3364_v21, %v1304_v42 }
  0x97   :  { %1216 = vmatpush.msra.mxu2 %v3257_v59  ;;  %1271 = vmatpush.msra.mxu3 %v1270_v9  ;;  %v1288_v9 = vand.u32 4294901760, %v1287_v22  ;;  %v1294_v22 = vand.u32 4294901760, %v1293_v7  ;;  %v1316_v63 = vand.u32 4294901760, %v3395_v1 }
  0x98   :  { %1120 = vmatpush.msra.mxu0 %v4204_v14  ;;  %1173 = vmatpush.msra.mxu1 %v3007_v15  ;;  %v3414_v15 = vsub.f32 %v68_v28, %v3384_v34  ;;  %v3424_v14 = vand.u32 4294901760, %v64_v24  ;;  %v1300_v28 = vand.u32 4294901760, %v1299_v58  ;;  %v3434_v7 = vsub.f32 %v66_v37, %v3408_v26 }
  0x99   :  { %1218 = vmatpush.msra.mxu2 %v3272_v53  ;;  %1277 = vmatpush.msra.mxu3 %v1276_v48  ;;  %v62_v48 = vld [vmem:[%s4090_s1 + $0x128] sm:$0xff]  ;;  %v1317_v37 = vsub.f32 %v3395_v1, %v1316_v63 }
  0x9a   :  { %1124 = vmatpush.msra.mxu0 %v4205_v45  ;;  %1175 = vmatpush.msra.mxu1 %v3013_v23  ;;  %v4206_v23 = vand.u32 4294901760, %v3118_v44  ;;  %v3436_v45 = vand.u32 4294901760, %v62_v48  ;;  %v60_v44 = vld [vmem:[%s4090_s1 + $0x118] sm:$0xff]  ;;  %v3450_v58 = vsub.f32 %v64_v24, %v3424_v14 }
  0x9b   :  { %1220 = vmatpush.msra.mxu2 %v3288_v5  ;;  %1283 = vmatpush.msra.mxu3 %v1282_v52  ;;  %v1311_v52 = vsub.f32 %v3379_v8, %v4145_v29  ;;  %v4208_v29 = vand.u32 4294901760, %v3147_v40  ;;  %v4209_v40 = vand.u32 4294901760, %v3172_v2 }
  0x9c   :  { %1128 = vmatpush.msra.mxu0 %v4206_v23  ;;  %1177 = vmatpush.msra.mxu1 %v3035_v3  ;;  %v4207_v23 = vand.u32 4294901760, %v3142_v47  ;;  %v1322_v3 = vand.u32 4294901760, %v3414_v15  ;;  %v3455_v47 = vand.u32 4294901760, %v60_v44  ;;  %v3463_v24 = vsub.f32 %v62_v48, %v3436_v45 }
  0x9d   :  { %1222 = vmatpush.msra.mxu2 %v3303_v33  ;;  %1289 = vmatpush.msra.mxu3 %v1288_v9  ;;  %v1306_v9 = vand.u32 4294901760, %v1305_v17  ;;  %v1328_v17 = vand.u32 4294901760, %v3434_v7  ;;  %v4210_v48 = vand.u32 4294901760, %v3184_v30 }
  0x9e   :  { %1132 = vmatpush.msra.mxu0 %v4207_v23  ;;  %1179 = vmatpush.msra.mxu1 %v3039_v35  ;;  %v58_v35 = vld [vmem:[%s4090_s1 + $0x108] sm:$0xff]  ;;  %v3479_v2 = vsub.f32 %v60_v44, %v3455_v47  ;;  %v1340_v23 = vand.u32 4294901760, %v3463_v24  ;;  %s2338_s1 = smov 8  }
  0x9f   :  { %1224 = vmatpush.msra.mxu2 %v3321_v4  ;;  %1295 = vmatpush.msra.mxu3 %v1294_v22  ;;  %v1312_v22 = vand.u32 4294901760, %v1311_v52  ;;  %v3473_v52 = vand.u32 4294901760, %v58_v35 }
  0xa0   :  { %1136 = vmatpush.msra.mxu0 %v4208_v29  ;;  %1181 = vmatpush.msra.mxu1 %v3059_v0  ;;  %v1323_v0 = vsub.f32 %v3414_v15, %v1322_v3  ;;  %v1318_v29 = vand.u32 4294901760, %v1317_v37  ;;  %v4212_v37 = vand.u32 4294901760, %v3220_v51 }
  0xa1   :  { %1226 = vmatpush.msra.mxu2 %v3337_v60  ;;  %1301 = vmatpush.msra.mxu3 %v1300_v28  ;;  %v1334_v28 = vand.u32 4294901760, %v3450_v58  ;;  %v3494_v44 = vsub.f32 %v58_v35, %v3473_v52 }
  0xa2   :  { %1140 = vmatpush.msra.mxu0 %v4209_v40  ;;  %1183 = vmatpush.msra.mxu1 %v3079_v39  ;;  %v1329_v39 = vsub.f32 %v3434_v7, %v1328_v17  ;;  %v1324_v30 = vand.u32 4294901760, %v1323_v0  ;;  %v4216_v40 = vand.u32 4294901760, %v3250_v20  ;;  %v4218_v0 = vld [vmem:[#allocation7_spill] sm:$0xff] }
  0xa3   :  { %1228 = vmatpush.msra.mxu2 %v3353_v41  ;;  %1307 = vmatpush.msra.mxu3 %v1306_v9  ;;  %v4211_v9 = vand.u32 4294901760, %v3203_v12  ;;  %v1346_v12 = vand.u32 4294901760, %v3479_v2  ;;  %v1352_v35 = vand.u32 4294901760, %v3494_v44 }
  0xa4   :  { %1144 = vmatpush.msra.mxu0 %v4210_v48  ;;  %1185 = vmatpush.msra.mxu1 %v3086_v49  ;;  %v1335_v49 = vsub.f32 %v3450_v58, %v1334_v28  ;;  %v4221_v48 = vld [vmem:[#allocation5_spill] sm:$0xff] }
  0xa5   :  { %1230 = vmatpush.msra.mxu2 %v3366_v19  ;;  %1313 = vmatpush.msra.mxu3 %v1312_v22  ;;  %v1341_v22 = vsub.f32 %v3463_v24, %v1340_v23 }
  0xa6   :  { %1148 = vmatpush.msra.mxu0 %v4211_v9  ;;  %1187 = vmatpush.msra.mxu1 %v3108_v57  ;;  %v1330_v57 = vand.u32 4294901760, %v1329_v39  ;;  %v1336_v51 = vand.u32 4294901760, %v1335_v49  ;;  %v4223_v39 = vand.u32 4294901760, %v3286_v46  ;;  %v4225_v9 = vld [vmem:[#allocation12_spill] sm:$0xff] }
  0xa7   :  { %1232 = vmatpush.msra.mxu2 %v3384_v34  ;;  %1319 = vmatpush.msra.mxu3 %v1318_v29  ;;  %v4219_v29 = vld [vmem:[#allocation17_spill] sm:$0xff] }
  0xa8   :  { %1043 = vmatmul.f32.vlgmr.msrb.gmra.mxu2 %v2780_v38  ;;  %1152 = vmatpush.msra.mxu0 %v4212_v37  ;;  %v4213_v38 = vand.u32 4294901760, %v3239_v27 }
  0xa9   :  { %1189 = vmatpush.msra.mxu1 %v3115_v13  ;;  %1234 = vmatpush.msra.mxu2 %v3408_v26  ;;  %v1347_v13 = vsub.f32 %v3479_v2, %v1346_v12 }
  0xaa   :  { %1325 = vmatpush.msra.mxu3 %v1324_v30  ;;  %876 = vmatmul.f32.vlgmr.msrb.gmra.mxu0 %v2862_v61  ;;  %v1342_v61 = vand.u32 4294901760, %v1341_v22 }
  0xab   :  { %1087 = vmatmul.f32.vlgmr.msrb.gmra.mxu3 %v2814_v32  ;;  %1156 = vmatpush.msra.mxu0 %v4213_v38  ;;  %v4214_v32 = vand.u32 4294901760, %v3247_v11  ;;  %v1348_v27 = vand.u32 4294901760, %v1347_v13  ;;  %v4215_v11 = vld [vmem:[#allocation6_spill] sm:$0xff] }
  0xac   :  { %1191 = vmatpush.msra.mxu1 %v3138_v54  ;;  %1236 = vmatpush.msra.mxu2 %v3424_v14  ;;  %v1353_v54 = vsub.f32 %v3494_v44, %v1352_v35 }
  0xad   :  { %1331 = vmatpush.msra.mxu3 %v1330_v57  ;;  %985 = vmatmul.f32.vlgmr.msrb.gmra.mxu1 %v2750_v36 }
  0xae   :  { %1160 = vmatpush.msra.mxu0 %v4214_v32  ;;  %1193 = vmatpush.msra.mxu1 %v3157_v43  ;;  %v1354_v43 = vand.u32 4294901760, %v1353_v54 }
  0xaf   :  { %1238 = vmatpush.msra.mxu2 %v3436_v45  ;;  %1337 = vmatpush.msra.mxu3 %v1336_v51  ;;  %v1595_v51 = vld [vmem:[%s4092_s3 + $0x40] sm:$0xff] }
  0xb0   :  { %1367 = vmatpush.msrb.mxu0 %v3250_v20  ;;  %1195 = vmatpush.msra.mxu1 %v3168_v25  ;;  %v4217_v25 = vld [vmem:[#allocation10_spill] sm:$0xff] }
  0xb1   :  { %1240 = vmatpush.msra.mxu2 %v3455_v47  ;;  %1343 = vmatpush.msra.mxu3 %v1342_v61  ;;  %v4222_v20 = vld [vmem:[#allocation18_spill] sm:$0xff]  ;;  %v4232_v61 = vld [vmem:[#allocation9_spill] sm:$0xff] }
  0xb2   :  { %1370 = vmatpush.msrb.mxu0 %v3264_v31  ;;  %1048 = vmatmul.f32.gmra.mxu2 %v4215_v11 }
  0xb3   :  { %1197 = vmatpush.msra.mxu1 %v3181_v55  ;;  %1242 = vmatpush.msra.mxu2 %v3473_v52  ;;  %v4220_v55 = vand.u32 4294901760, %v3264_v31  ;;  %v4224_v31 = vand.u32 4294901760, %v3301_v56 }
  0xb4   :  { %1349 = vmatpush.msra.mxu3 %v1348_v27  ;;  %1373 = vmatpush.msrb.mxu0 %v3286_v46  ;;  %v4226_v46 = vand.u32 4294901760, %v3319_v6  ;;  %v3690_v27 = vand.u32 4294901760, %v1595_v51 }
  0xb5   :  { %1472 = vmatpush.msrb.mxu2 %v4216_v40  ;;  %884 = vmatmul.f32.gmra.mxu0 %v4217_v25 }
  0xb6   :  { %1093 = vmatmul.f32.gmra.mxu3 %v4218_v0  ;;  %1199 = vmatpush.msra.mxu1 %v4219_v29  ;;  %v1593_v0 = vld [vmem:[%s4092_s3 + $0x30] sm:$0xff] }
  0xb7   :  { %1355 = vmatpush.msra.mxu3 %v1354_v43  ;;  %1376 = vmatpush.msrb.mxu0 %v3301_v56  ;;  %v4228_v56 = vand.u32 4294901760, %v3335_v10 }
  0xb8   :  { %1476 = vmatpush.msrb.mxu2 %v4220_v55  ;;  %989 = vmatmul.f32.gmra.mxu1 %v4221_v48 }
  0xb9   :  { %1543 = vmatpush.msrb.mxu3 %v3222_v50  ;;  %1379 = vmatpush.msrb.mxu0 %v3319_v6  ;;  %v3596_v6 = vld [vmem:[%s4091_s2] sm:$0x3] }
  0xba   :  { %1201 = vmatpush.msra.mxu1 %v4222_v20  ;;  %1480 = vmatpush.msrb.mxu2 %v4223_v39  ;;  %v3721_v20 = vsub.f32 %v1595_v51, %v3690_v27  ;;  %v1592_v39 = vld [vmem:[%s4092_s3 + $0x28] sm:$0xff] }
  0xbb   :  { %1545 = vmatpush.msrb.mxu3 %v3231_v62  ;;  %1382 = vmatpush.msrb.mxu0 %v3335_v10  ;;  %v4229_v10 = vld [vmem:[#allocation16_spill] sm:$0xff] }
  0xbc   :  { %1425 = vmatpush.msrb.mxu1 %v3222_v50  ;;  %1484 = vmatpush.msrb.mxu2 %v4224_v31  ;;  %v4227_v50 = vld [vmem:[#allocation8_spill] sm:$0xff] }
  0xbd   :  { %1547 = vmatpush.msrb.mxu3 %v3257_v59  ;;  %1248 = vmatmul.f32.vlgmr.msra.gmra.mxu2 %v4225_v9 }
  0xbe   :  { %1427 = vmatpush.msrb.mxu1 %v3231_v62  ;;  %1385 = vmatpush.msrb.mxu0 %v3351_v16  ;;  %v133_v62 = vpop.f32.mrf.mxu0 }
  0xbf   :  { %1488 = vmatpush.msrb.mxu2 %v4226_v46  ;;  %1549 = vmatpush.msrb.mxu3 %v3272_v53  ;;  %v3732_v46 = vand.u32 4294901760, %v1593_v0 }
  0xc0   :  { %1429 = vmatpush.msrb.mxu1 %v3257_v59  ;;  %1162 = vmatmul.f32.vlgmr.msra.gmra.mxu0 %v2750_v36  ;;  %v242_v16 = vpop.f32.mrf.mxu1 }
  0xc1   :  { %1357 = vmatmul.f32.vlgmr.msra.gmra.mxu3 %v4227_v50  ;;  %1388 = vmatpush.msrb.mxu0 %v3364_v21  ;;  %v1600_v21 = vld [vmem:[%s4092_s3 + $0x68] sm:$0xff] }
  0xc2   :  { %1431 = vmatpush.msrb.mxu1 %v3272_v53  ;;  %1492 = vmatpush.msrb.mxu2 %v4228_v56  ;;  %v1601_v53 = vld [vmem:[%s4092_s3 + $0x70] sm:$0xff]  ;;  %v3616_v30 = vpop.f32.mrf.mxu3  ;;  %v1591_v56 = vld [vmem:[%s4092_s3 + $0x20] sm:$0xff] }
  0xc3   :  { %1551 = vmatpush.msrb.mxu3 %v3288_v5  ;;  %1203 = vmatmul.f32.vlgmr.msra.gmra.mxu1 %v2750_v36  ;;  %v1602_v36 = vld [vmem:[%s4092_s3 + $0x78] sm:$0xff] }
  0xc4   :  { %1391 = vmatpush.msrb.mxu0 %v3379_v8  ;;  %1433 = vmatpush.msrb.mxu1 %v3288_v5  ;;  %v3589_v59 = vand.u32 4294901760, %v1602_v36  ;;  %v4231_v5 = vld [vmem:[#allocation13_spill] sm:$0xff] }
  0xc5   :  { %1496 = vmatpush.msrb.mxu2 %v1298_v18  ;;  %1553 = vmatpush.msrb.mxu3 %v3303_v33  ;;  %v1599_v18 = vld [vmem:[%s4092_s3 + $0x60] sm:$0xff] }
  0xc6   :  { %1394 = vmatpush.msrb.mxu0 %v3395_v1  ;;  %1435 = vmatpush.msrb.mxu1 %v3303_v33  ;;  %v4230_v33 = vand.u32 4294901760, %v3379_v8  ;;  %v3600_v8 = vand.u32 4294901760, %v1601_v53  ;;  %v3621_v1 = vand.u32 4294901760, %v1600_v21  ;;  %v3634_v37 = vand.u32 4294901760, %v1599_v18 }
  0xc7   :  { %1500 = vmatpush.msrb.mxu2 %v1304_v42  ;;  %1555 = vmatpush.msrb.mxu3 %v3321_v4  ;;  %v91_v42 = vperm.slane %v3596_v6, 0 }
  0xc8   :  { %1256 = vmatmul.f32.gmra.mxu2 %v4229_v10  ;;  %1397 = vmatpush.msrb.mxu0 %v3414_v15  ;;  %v3627_v49 = vsub.f32 %v1601_v53, %v3600_v8  ;;  %v1597_v15 = vld [vmem:[%s4092_s3 + $0x50] sm:$0xff]  ;;  %v4234_v10 = vld [vmem:[#allocation14_spill] sm:$0xff] }
  0xc9   :  { %1437 = vmatpush.msrb.mxu1 %v3321_v4  ;;  %1504 = vmatpush.msrb.mxu2 %v4230_v33  ;;  %v3598_v4 = vpop.f32.mrf.mxu2  ;;  %v3662_v38 = vand.u32 4294901760, %v1597_v15 }
  0xca   :  { %1557 = vmatpush.msrb.mxu3 %v3337_v60  ;;  %1166 = vmatmul.f32.gmra.mxu0 %v4221_v48 }
  0xcb   :  { %1361 = vmatmul.f32.gmra.mxu3 %v4231_v5  ;;  %1400 = vmatpush.msrb.mxu0 %v3434_v7  ;;  %v1596_v7 = vld [vmem:[%s4092_s3 + $0x48] sm:$0xff] }
  0xcc   :  { %1439 = vmatpush.msrb.mxu1 %v3337_v60  ;;  %1508 = vmatpush.msrb.mxu2 %v1316_v63  ;;  %v3619_v60 = vsub.f32 %v1602_v36, %v3589_v59  ;;  %v141_v63 = vpop.f32.mrf.mxu0  ;;  %v3670_v13 = vand.u32 4294901760, %v1596_v7 }
  0xcd   :  { %1559 = vmatpush.msrb.mxu3 %v3353_v41  ;;  %1207 = vmatmul.f32.gmra.mxu1 %v4221_v48  ;;  %v142_v11 = vadd.f32 %v141_v63, %v91_v42 }
  0xce   :  { %1403 = vmatpush.msrb.mxu0 %v3450_v58  ;;  %1441 = vmatpush.msrb.mxu1 %v3353_v41  ;;  %v1598_v41 = vld [vmem:[%s4092_s3 + $0x58] sm:$0xff]  ;;  %v1673_v57 = vand.u32 4294901760, %v3619_v60  ;;  %v246_v58 = vpop.f32.mrf.mxu1  ;;  %v3693_v43 = vpop.f32.mrf.mxu3  ;;  %v3704_v25 = vsub.f32 %v1596_v7, %v3670_v13 }
  0xcf   :  { %1512 = vmatpush.msrb.mxu2 %v1322_v3  ;;  %1561 = vmatpush.msrb.mxu3 %v3366_v19  ;;  %v134_v3 = vadd.f32 %v133_v62, %v91_v42  ;;  %v3648_v22 = vand.u32 4294901760, %v1598_v41  ;;  %v4233_v62 = vld [vmem:[#allocation11_spill] sm:$0xff]  ;;  %v3753_v42 = vand.u32 4294901760, %v1591_v56 }
  0xd0   :  { %1406 = vmatpush.msrb.mxu0 %v3463_v24  ;;  %1443 = vmatpush.msrb.mxu1 %v3366_v19  ;;  %v3646_v19 = vsub.f32 %v1600_v21, %v3621_v1  ;;  %v1674_v32 = vsub.f32 %v3619_v60, %v1673_v57 }
  0xd1   :  { %1516 = vmatpush.msrb.mxu2 %v1328_v17  ;;  %1563 = vmatpush.msrb.mxu3 %v3384_v34  ;;  %v1679_v17 = vand.u32 4294901760, %v3627_v49  ;;  %v3679_v24 = vsub.f32 %v1598_v41, %v3648_v22 }
  0xd2   :  { %1409 = vmatpush.msrb.mxu0 %v3479_v2  ;;  %1445 = vmatpush.msrb.mxu1 %v3384_v34  ;;  %v3660_v34 = vsub.f32 %v1599_v18, %v3634_v37  ;;  %v1685_v54 = vand.u32 4294901760, %v3646_v19  ;;  %v3698_v2 = vsub.f32 %v1597_v15, %v3662_v38  ;;  %v1715_v18 = vand.u32 4294901760, %v3721_v20 }
  0xd3   :  { %1520 = vmatpush.msrb.mxu2 %v1334_v28  ;;  %1565 = vmatpush.msrb.mxu3 %v3408_v26  ;;  %v305_v28 = vpop.f32.mrf.mxu2  ;;  %v1697_v55 = vand.u32 4294901760, %v3679_v24 }
  0xd4   :  { %1412 = vmatpush.msrb.mxu0 %v3494_v44  ;;  %1447 = vmatpush.msrb.mxu1 %v3408_v26  ;;  %v243_v26 = vadd.f32 %v242_v16, %v134_v3  ;;  %v1691_v40 = vand.u32 4294901760, %v3660_v34  ;;  %v1675_v44 = vand.u32 4294901760, %v1674_v32  ;;  %v1703_v9 = vand.u32 4294901760, %v3698_v2 }
  0xd5   :  { %1524 = vmatpush.msrb.mxu2 %v1340_v23  ;;  %1567 = vmatpush.msrb.mxu3 %v3424_v14  ;;  %v1594_v23 = vld [vmem:[%s4092_s3 + $0x38] sm:$0xff]  ;;  %v1698_v33 = vsub.f32 %v3679_v24, %v1697_v55  ;;  %v3748_v16 = vand.u32 4294901760, %v1592_v39  ;;  %v3762_v3 = vsub.f32 %v1593_v0, %v3732_v46  ;;  %v3786_v0 = vsub.f32 %v1591_v56, %v3753_v42 }
  0xd6   :  { %1415 = vmatmul.f32.vlgmr.msrb.gmra.mxu0 %v4232_v61  ;;  %1449 = vmatpush.msrb.mxu1 %v3424_v14  ;;  %v1680_v14 = vsub.f32 %v3627_v49, %v1679_v17  ;;  %v301_v29 = vadd.f32 %v3598_v4, %v243_v26  ;;  %v1692_v31 = vsub.f32 %v3660_v34, %v1691_v40  ;;  %v460_v4 = vpop.f32.mrf.mxu1 }
  0xd7   :  { %1528 = vmatpush.msrb.mxu2 %v1346_v12  ;;  %1569 = vmatpush.msrb.mxu3 %v3436_v45  ;;  %v419_v12 = vpop.f32.mrf.mxu0  ;;  %v1704_v15 = vsub.f32 %v3698_v2, %v1703_v9  ;;  %v1699_v61 = vand.u32 4294901760, %v1698_v33  ;;  %v3776_v32 = vsub.f32 %v1592_v39, %v3748_v16  ;;  %v4235_v39 = vld [vmem:[#allocation15_spill] sm:$0xff]  ;;  %v1739_v33 = vand.u32 4294901760, %v3786_v0 }
  0xd8   :  { %1451 = vmatpush.msrb.mxu1 %v3436_v45  ;;  %1623 = vmatpush.msra.mxu0 %v3589_v59  ;;  %v3706_v45 = vand.u32 4294901760, %v1594_v23  ;;  %v1681_v48 = vand.u32 4294901760, %v1680_v14  ;;  %v345_v36 = vadd.f32 %v3616_v30, %v301_v29  ;;  %v1590_v30 = vld [vmem:[%s4092_s3 + $0x18] sm:$0xff]  ;;  %v1693_v41 = vand.u32 4294901760, %v1692_v31  ;;  %v614_v26 = vpop.f32.mrf.mxu3 }
  0xd9   :  { %1532 = vmatpush.msrb.mxu2 %v1352_v35  ;;  %1571 = vmatpush.msrb.mxu3 %v3455_v47  ;;  %v1686_v35 = vsub.f32 %v3646_v19, %v1685_v54  ;;  %v1733_v56 = vand.u32 4294901760, %v3776_v32 }
  0xda   :  { %1534 = vmatmul.f32.vlgmr.msrb.gmra.mxu2 %v4227_v50  ;;  %1453 = vmatpush.msrb.mxu1 %v3455_v47  ;;  %v247_v47 = vadd.f32 %v246_v58, %v142_v11  ;;  %v1589_v58 = vld [vmem:[%s4092_s3 + $0x10] sm:$0xff]  ;;  %v1716_v11 = vsub.f32 %v3721_v20, %v1715_v18 }
  0xdb   :  { %1573 = vmatpush.msrb.mxu3 %v3473_v52  ;;  %1625 = vmatpush.msra.mxu0 %v3600_v8  ;;  %v1687_v53 = vand.u32 4294901760, %v1686_v35  ;;  %v505_v21 = vpop.f32.mrf.mxu2  ;;  %v1727_v35 = vand.u32 4294901760, %v3762_v3 }
  0xdc   :  { %1575 = vmatmul.f32.vlgmr.msrb.gmra.mxu3 %v4227_v50  ;;  %1455 = vmatpush.msrb.mxu1 %v3473_v52  ;;  %v1709_v50 = vand.u32 4294901760, %v3704_v25  ;;  %v3741_v52 = vsub.f32 %v1594_v23, %v3706_v45  ;;  %v306_v63 = vadd.f32 %v305_v28, %v247_v47  ;;  %v420_v28 = vadd.f32 %v419_v12, %v345_v36  ;;  %v1588_v12 = vld [vmem:[%s4092_s3 + $0x8] sm:$0xff] }
  0xdd   :  { %1459 = vmatmul.f32.vlgmr.msrb.gmra.mxu1 %v4233_v62  ;;  %1627 = vmatpush.msra.mxu0 %v3621_v1  ;;  %v3778_v23 = vand.u32 4294901760, %v1590_v30  ;;  %v3809_v36 = vand.u32 4294901760, %v1588_v12 }
  0xde   :  { %1420 = vmatmul.f32.gmra.mxu0 %v4234_v10  ;;  %1676 = vmatpush.msra.mxu1 %v1675_v44  ;;  %v1710_v7 = vsub.f32 %v3704_v25, %v1709_v50  ;;  %v1721_v51 = vand.u32 4294901760, %v3741_v52  ;;  %v351_v29 = vadd.f32 %v3693_v43, %v306_v63  ;;  %v1705_v44 = vand.u32 4294901760, %v1704_v15  ;;  %v1587_v43 = vld [vmem:[%s4092_s3] sm:$0xff] }
  0xdf   :  { %1629 = vmatpush.msra.mxu0 %v3634_v37  ;;  %1778 = vmatpush.msra.mxu2 %v3619_v60  ;;  %v423_v14 = vpop.f32.mrf.mxu0  ;;  %v3807_v62 = vsub.f32 %v1590_v30, %v3778_v23  ;;  %v1717_v10 = vand.u32 4294901760, %v1716_v11  ;;  %v3821_v15 = vand.u32 4294901760, %v1587_v43 }
  0xe0   :  { %1682 = vmatpush.msra.mxu1 %v1681_v48  ;;  %1836 = vmatpush.msra.mxu3 %v3589_v59  ;;  %v3794_v48 = vand.u32 4294901760, %v1589_v58  ;;  %v1711_v47 = vand.u32 4294901760, %v1710_v7  ;;  %v1722_v31 = vsub.f32 %v3741_v52, %v1721_v51 }
  0xe1   :  { %1631 = vmatpush.msra.mxu0 %v3648_v22  ;;  %1781 = vmatpush.msra.mxu2 %v3627_v49 }
  0xe2   :  { %1538 = vmatmul.f32.gmra.mxu2 %v4231_v5  ;;  %1688 = vmatpush.msra.mxu1 %v1687_v53  ;;  %v3819_v30 = vsub.f32 %v1589_v58, %v3794_v48  ;;  %v1723_v7 = vand.u32 4294901760, %v1722_v31  ;;  %v3831_v58 = vsub.f32 %v1588_v12, %v3809_v36 }
  0xe3   :  { %1633 = vmatpush.msra.mxu0 %v3662_v38  ;;  %1784 = vmatpush.msra.mxu2 %v3646_v19 }
  0xe4   :  { %1579 = vmatmul.f32.gmra.mxu3 %v4231_v5  ;;  %1694 = vmatpush.msra.mxu1 %v1693_v41  ;;  %v461_v5 = vadd.f32 %v460_v4, %v420_v28  ;;  %v424_v4 = vadd.f32 %v423_v14, %v351_v29  ;;  %v1728_v41 = vsub.f32 %v3762_v3, %v1727_v35  ;;  %v1745_v14 = vand.u32 4294901760, %v3807_v62 }
  0xe5   :  { %1465 = vmatmul.f32.gmra.mxu1 %v4235_v39  ;;  %1635 = vmatpush.msra.mxu0 %v3670_v13  ;;  %v1740_v29 = vsub.f32 %v3786_v0, %v1739_v33  ;;  %v1751_v39 = vand.u32 4294901760, %v3819_v30 }
  0xe6   :  { %1700 = vmatpush.msra.mxu1 %v1699_v61  ;;  %1838 = vmatpush.msra.mxu3 %v3600_v8  ;;  %v464_v53 = vpop.f32.mrf.mxu1  ;;  %v506_v28 = vadd.f32 %v505_v21, %v461_v5  ;;  %v1734_v61 = vsub.f32 %v3776_v32, %v1733_v56  ;;  %v1729_v21 = vand.u32 4294901760, %v1728_v41 }
  0xe7   :  { %1637 = vmatpush.msra.mxu0 %v3690_v27  ;;  %1787 = vmatpush.msra.mxu2 %v3660_v34  ;;  %v513_v63 = vpop.f32.mrf.mxu2  ;;  %v672_v12 = vpop.f32.mrf.mxu0 }
  0xe8   :  { %1706 = vmatpush.msra.mxu1 %v1705_v44  ;;  %1840 = vmatpush.msra.mxu3 %v3621_v1  ;;  %v465_v44 = vadd.f32 %v464_v53, %v424_v4  ;;  %v615_v31 = vadd.f32 %v614_v26, %v506_v28  ;;  %v1735_v5 = vand.u32 4294901760, %v1734_v61  ;;  %v1757_v53 = vand.u32 4294901760, %v3831_v58 }
  0xe9   :  { %1639 = vmatpush.msra.mxu0 %v3706_v45  ;;  %1790 = vmatpush.msra.mxu2 %v3679_v24  ;;  %v1741_v4 = vand.u32 4294901760, %v1740_v29  ;;  %v1752_v26 = vsub.f32 %v3819_v30, %v1751_v39 }
  0xea   :  { %1712 = vmatpush.msra.mxu1 %v1711_v47  ;;  %1842 = vmatpush.msra.mxu3 %v3634_v37  ;;  %v618_v11 = vpop.f32.mrf.mxu3  ;;  %v3841_v47 = vsub.f32 %v1587_v43, %v3821_v15  ;;  %v673_v43 = vadd.f32 %v672_v12, %v615_v31  ;;  %v514_v41 = vadd.f32 %v513_v63, %v465_v44 }
  0xeb   :  { %1641 = vmatpush.msra.mxu0 %v3732_v46  ;;  %1793 = vmatpush.msra.mxu2 %v3698_v2  ;;  %v1758_v63 = vsub.f32 %v3831_v58, %v1757_v53  ;;  %v1753_v12 = vand.u32 4294901760, %v1752_v26 }
  0xec   :  { %1718 = vmatpush.msra.mxu1 %v1717_v10  ;;  %1844 = vmatpush.msra.mxu3 %v3648_v22  ;;  %v1746_v10 = vsub.f32 %v3807_v62, %v1745_v14  ;;  %v619_v44 = vadd.f32 %v618_v11, %v514_v41 }
  0xed   :  { %1643 = vmatpush.msra.mxu0 %v3748_v16  ;;  %1796 = vmatpush.msra.mxu2 %v3704_v25  ;;  %v1609_v25 = vld [vmem:[%s4092_s3 + $0xb0] sm:$0xff] }
  0xee   :  { %1724 = vmatpush.msra.mxu1 %v1723_v7  ;;  %1846 = vmatpush.msra.mxu3 %v3662_v38  ;;  %v1763_v7 = vand.u32 4294901760, %v3841_v47  ;;  %v1747_v29 = vand.u32 4294901760, %v1746_v10 }
  0xef   :  { %1645 = vmatpush.msra.mxu0 %v3753_v42  ;;  %1799 = vmatpush.msra.mxu2 %v3721_v20  ;;  %v92_v20 = vperm.slane %v3596_v6, 1  ;;  %v1607_v6 = vld [vmem:[%s4092_s3 + $0xa0] sm:$0xff] }
  0xf0   :  { %1730 = vmatpush.msra.mxu1 %v1729_v21  ;;  %1848 = vmatpush.msra.mxu3 %v3670_v13  ;;  %v1764_v31 = vsub.f32 %v3841_v47, %v1763_v7 }
  0xf1   :  { %v716_v28 = vpop.f32.mrf.mxu1  ;;  %v791_v61 = vpop.f32.mrf.mxu2  ;;  %1647 = vmatpush.msra.mxu0 %v3778_v23  ;;  %1802 = vmatpush.msra.mxu2 %v3741_v52 }
  0xf2   :  { %1736 = vmatpush.msra.mxu1 %v1735_v5  ;;  %v717_v21 = vadd.f32 %v716_v28, %v673_v43  ;;  %1850 = vmatpush.msra.mxu3 %v3690_v27  ;;  %v1759_v43 = vand.u32 4294901760, %v1758_v63  ;;  %v1765_v11 = vand.u32 4294901760, %v1764_v31 }
  0xf3   :  { %1649 = vmatpush.msra.mxu0 %v3794_v48  ;;  %1805 = vmatpush.msra.mxu2 %v3762_v3 }
  0xf4   :  { %1742 = vmatpush.msra.mxu1 %v1741_v4  ;;  %v792_v5 = vadd.f32 %v791_v61, %v717_v21  ;;  %v832_v10 = vpop.f32.mrf.mxu3  ;;  %1852 = vmatpush.msra.mxu3 %v3706_v45  ;;  %v1604_v21 = vld [vmem:[%s4092_s3 + $0x88] sm:$0xff] }
  0xf5   :  { %1651 = vmatpush.msra.mxu0 %v3809_v36  ;;  %1808 = vmatpush.msra.mxu2 %v3776_v32  ;;  %v4015_v31 = vand.u32 4294901760, %v1604_v21 }
  0xf6   :  { %1748 = vmatpush.msra.mxu1 %v1747_v29  ;;  %v833_v28 = vadd.f32 %v832_v10, %v792_v5  ;;  %1854 = vmatpush.msra.mxu3 %v3732_v46 }
  0xf7   :  { %v677_v4 = vpop.f32.mrf.mxu0  ;;  %1653 = vmatpush.msra.mxu0 %v3821_v15  ;;  %1811 = vmatpush.msra.mxu2 %v3786_v0  ;;  %v3976_v0 = vand.u32 4294901760, %v1607_v6 }
  0xf8   :  { %1754 = vmatpush.msra.mxu1 %v1753_v12  ;;  %2302 = vtanh.f32 %v833_v28  ;;  %v678_v41 = vadd.f32 %v677_v4, %v619_v44  ;;  %1856 = vmatpush.msra.mxu3 %v3748_v16 }
  0xf9   :  { %1883 = vmatpush.msrb.mxu0 %v1673_v57  ;;  %1814 = vmatpush.msra.mxu2 %v3807_v62 }
  0xfa   :  { %1760 = vmatpush.msra.mxu1 %v1759_v43  ;;  %v722_v26 = vpop.f32.mrf.mxu1  ;;  %1858 = vmatpush.msra.mxu3 %v3753_v42  ;;  %v1603_v43 = vld [vmem:[%s4092_s3 + $0x80] sm:$0xff] }
  0xfb   :  { %v723_v61 = vadd.f32 %v722_v26, %v678_v41  ;;  %v795_v29 = vpop.f32.mrf.mxu2  ;;  %1887 = vmatpush.msrb.mxu0 %v1679_v17  ;;  %1817 = vmatpush.msra.mxu2 %v3819_v30  ;;  %v1605_v30 = vld [vmem:[%s4092_s3 + $0x90] sm:$0xff]  ;;  %v4030_v41 = vand.u32 4294901760, %v1603_v43 }
  0xfc   :  { %1766 = vmatpush.msra.mxu1 %v1765_v11  ;;  %1860 = vmatpush.msra.mxu3 %v3778_v23  ;;  %v2080_v11 = vsub.f32 %v1604_v21, %v4015_v31 }
  0xfd   :  { %v796_v60 = vadd.f32 %v795_v29, %v723_v61  ;;  %1891 = vmatpush.msrb.mxu0 %v1685_v54  ;;  %1820 = vmatpush.msra.mxu2 %v3831_v58  ;;  %v4001_v58 = vand.u32 4294901760, %v1605_v30 }
  0xfe   :  { %1954 = vmatpush.msrb.mxu1 %v3589_v59  ;;  %v2303_v57 = vpop.eup %2302  ;;  %v836_v63 = vpop.f32.mrf.mxu3  ;;  %1862 = vmatpush.msra.mxu3 %v3794_v48 }
  0xff   :  { %v837_v49 = vadd.f32 %v836_v63, %v796_v60  ;;  %1895 = vmatpush.msrb.mxu0 %v1691_v40  ;;  %v1654_v17 = vand.u32 4294901760, %v2303_v57  ;;  %1823 = vmatpush.msra.mxu2 %v3841_v47  ;;  %v2074_v12 = vsub.f32 %v1605_v30, %v4001_v58 }
 0x100   :  { %1956 = vmatpush.msrb.mxu1 %v3600_v8  ;;  %1864 = vmatpush.msra.mxu3 %v3809_v36 }
 0x101   :  { %2304 = vtanh.f32 %v837_v49  ;;  %1899 = vmatpush.msrb.mxu0 %v1697_v55  ;;  %v1655_v59 = vsub.f32 %v2303_v57, %v1654_v17  ;;  %1768 = vmatmul.f32.vlgmr.msra.gmra.mxu1 %v1654_v17  ;;  %v3944_v55 = vand.u32 4294901760, %v1609_v25  ;;  %v4027_v4 = vand.u32 4294901760, %v2074_v12 }
 0x102   :  { %1958 = vmatpush.msrb.mxu1 %v3621_v1  ;;  %1866 = vmatpush.msra.mxu3 %v3821_v15 }
 0x103   :  { %1826 = vmatmul.f32.vlgmr.msra.gmra.mxu2 %v1655_v59  ;;  %v1656_v8 = vand.u32 4294901760, %v1655_v59  ;;  %1903 = vmatpush.msrb.mxu0 %v1703_v9  ;;  %v1608_v9 = vld [vmem:[%s4092_s3 + $0xa8] sm:$0xff]  ;;  %v3955_v52 = vsub.f32 %v1609_v25, %v3944_v55  ;;  %v2076_v49 = vsub.f32 %v2074_v12, %v4027_v4 }
 0x104   :  { %1960 = vmatpush.msrb.mxu1 %v3634_v37 }
 0x105   :  { %1870 = vmatmul.f32.vlgmr.msra.gmra.mxu3 %v1656_v8  ;;  %v1657_v19 = vsub.f32 %v1655_v59, %v1656_v8  ;;  %1907 = vmatpush.msrb.mxu0 %v1709_v50  ;;  %v2086_v59 = vsub.f32 %v1603_v43, %v4030_v41 }
 0x106   :  { %1962 = vmatpush.msrb.mxu1 %v3648_v22 }
 0x107   :  { %v2305_v1 = vpop.eup %2304  ;;  %v1658_v34 = vand.u32 4294901760, %v1657_v19  ;;  %1911 = vmatpush.msrb.mxu0 %v1715_v18  ;;  %v2077_v19 = vand.u32 4294901760, %v2076_v49 }
 0x108   :  { %1964 = vmatpush.msrb.mxu1 %v3662_v38  ;;  %v1662_v37 = vand.u32 4294901760, %v2305_v1 }
 0x109   :  { %1659 = vmatmul.f32.vlgmr.msra.gmra.mxu0 %v1658_v34  ;;  %v4044_v34 = vand.u32 4294901760, %v2086_v59 }
 0x10a   :  { %1966 = vmatpush.msrb.mxu1 %v3670_v13  ;;  %1915 = vmatpush.msrb.mxu0 %v1721_v51  ;;  %v1663_v22 = vsub.f32 %v2305_v1, %v1662_v37  ;;  %v3970_v51 = vand.u32 4294901760, %v3955_v52 }
 0x10b   :  { %1772 = vmatmul.f32.gmra.mxu1 %v1662_v37 }
 0x10c   :  { %1968 = vmatpush.msrb.mxu1 %v3690_v27  ;;  %1831 = vmatmul.f32.gmra.mxu2 %v1663_v22  ;;  %v1664_v38 = vand.u32 4294901760, %v1663_v22  ;;  %v1610_v27 = vld [vmem:[%s4092_s3 + $0xb8] sm:$0xff] }
 0x10d   :  { %1919 = vmatpush.msrb.mxu0 %v1727_v35  ;;  %v3935_v40 = vand.u32 4294901760, %v1610_v27  ;;  %v1606_v35 = vld [vmem:[%s4092_s3 + $0x98] sm:$0xff] }
 0x10e   :  { %1970 = vmatpush.msrb.mxu1 %v3706_v45  ;;  %1876 = vmatmul.f32.gmra.mxu3 %v1664_v38  ;;  %v1665_v13 = vsub.f32 %v1663_v22, %v1664_v38 }
 0x10f   :  { %1923 = vmatpush.msrb.mxu0 %v1733_v56  ;;  %v3941_v45 = vsub.f32 %v1610_v27, %v3935_v40  ;;  %2003 = vmatpush.msrb.mxu2 %v3935_v40  ;;  %v2052_v56 = vsub.f32 %v3955_v52, %v3970_v51 }
 0x110   :  { %1972 = vmatpush.msrb.mxu1 %v3732_v46  ;;  %v1666_v54 = vand.u32 4294901760, %v1665_v13  ;;  %v2088_v13 = vsub.f32 %v2086_v59, %v4044_v34 }
 0x111   :  { %1927 = vmatpush.msrb.mxu0 %v1739_v33  ;;  %v3952_v50 = vand.u32 4294901760, %v3941_v45  ;;  %2005 = vmatpush.msrb.mxu2 %v3944_v55  ;;  %v3992_v33 = vand.u32 4294901760, %v1606_v35 }
 0x112   :  { %1974 = vmatpush.msrb.mxu1 %v3748_v16  ;;  %1667 = vmatmul.f32.gmra.mxu0 %v1666_v54  ;;  %v3958_v16 = vand.u32 4294901760, %v1608_v9 }
 0x113   :  { %1931 = vmatpush.msrb.mxu0 %v1745_v14  ;;  %v2046_v3 = vsub.f32 %v3941_v45, %v3952_v50 }
 0x114   :  { %1976 = vmatpush.msrb.mxu1 %v3753_v42  ;;  %v3973_v32 = vsub.f32 %v1608_v9, %v3958_v16  ;;  %2007 = vmatpush.msrb.mxu2 %v3958_v16 }
 0x115   :  { %1935 = vmatpush.msrb.mxu0 %v1751_v39 }
 0x116   :  { %1978 = vmatpush.msrb.mxu1 %v3778_v23  ;;  %v3986_v62 = vand.u32 4294901760, %v3973_v32  ;;  %2009 = vmatpush.msrb.mxu2 %v3976_v0 }
 0x117   :  { %1939 = vmatpush.msrb.mxu0 %v1757_v53 }
 0x118   :  { %1980 = vmatpush.msrb.mxu1 %v3794_v48  ;;  %v2047_v48 = vand.u32 4294901760, %v2046_v3  ;;  %v2058_v14 = vsub.f32 %v3973_v32, %v3986_v62  ;;  %2011 = vmatpush.msrb.mxu2 %v3992_v33 }
 0x119   :  { %1943 = vmatpush.msrb.mxu0 %v1763_v7  ;;  %v4007_v7 = vsub.f32 %v1606_v35, %v3992_v33 }
 0x11a   :  { %1982 = vmatpush.msrb.mxu1 %v3809_v36  ;;  %1945 = vmatmul.f32.vlgmr.msrb.gmra.mxu0 %v1654_v17  ;;  %v3989_v36 = vsub.f32 %v1607_v6, %v3976_v0  ;;  %v2059_v44 = vand.u32 4294901760, %v2058_v14 }
 0x11b   :  { %2191 = vmatpush.msra.mxu0 %v3952_v50  ;;  %2048 = vmatpush.msrb.mxu3 %v2047_v48  ;;  %v4021_v10 = vand.u32 4294901760, %v4007_v7 }
 0x11c   :  { %1984 = vmatpush.msrb.mxu1 %v3821_v15  ;;  %v2053_v15 = vand.u32 4294901760, %v2052_v56  ;;  %v4004_v53 = vand.u32 4294901760, %v3989_v36  ;;  %2013 = vmatpush.msrb.mxu2 %v4001_v58 }
 0x11d   :  { %1986 = vmatmul.f32.vlgmr.msrb.gmra.mxu1 %v1654_v17  ;;  %2195 = vmatpush.msra.mxu0 %v3970_v51  ;;  %v2070_v60 = vsub.f32 %v4007_v7, %v4021_v10  ;;  %v4038_v17 = vand.u32 4294901760, %v2080_v11 }
 0x11e   :  { %2238 = vmatpush.msra.mxu1 %v3935_v40  ;;  %2054 = vmatpush.msrb.mxu3 %v2053_v15  ;;  %v2064_v5 = vsub.f32 %v3989_v36, %v4004_v53 }
 0x11f   :  { %2199 = vmatpush.msra.mxu0 %v3986_v62  ;;  %2015 = vmatpush.msrb.mxu2 %v4015_v31  ;;  %v2071_v8 = vand.u32 4294901760, %v2070_v60  ;;  %v2082_v1 = vsub.f32 %v2080_v11, %v4038_v17 }
 0x120   :  { %2240 = vmatpush.msra.mxu1 %v3944_v55  ;;  %2060 = vmatpush.msrb.mxu3 %v2059_v44  ;;  %v2065_v29 = vand.u32 4294901760, %v2064_v5 }
 0x121   :  { %2203 = vmatpush.msra.mxu0 %v4004_v53  ;;  %2017 = vmatpush.msrb.mxu2 %v4030_v41  ;;  %v2083_v38 = vand.u32 4294901760, %v2082_v1 }
 0x122   :  { %1949 = vmatmul.f32.gmra.mxu0 %v1662_v37  ;;  %2242 = vmatpush.msra.mxu1 %v3958_v16 }
 0x123   :  { %2207 = vmatpush.msra.mxu0 %v4021_v10  ;;  %2066 = vmatpush.msrb.mxu3 %v2065_v29 }
 0x124   :  { %2244 = vmatpush.msra.mxu1 %v3976_v0  ;;  %2110 = vmatpush.msra.mxu2 %v3941_v45 }
 0x125   :  { %1990 = vmatmul.f32.gmra.mxu1 %v1662_v37  ;;  %2211 = vmatpush.msra.mxu0 %v4027_v4 }
 0x126   :  { %2246 = vmatpush.msra.mxu1 %v3992_v33  ;;  %2072 = vmatpush.msrb.mxu3 %v2071_v8 }
 0x127   :  { %v877_v24 = vpop.f32.mrf.mxu0  ;;  %2215 = vmatpush.msra.mxu0 %v4038_v17  ;;  %2113 = vmatpush.msra.mxu2 %v3955_v52 }
 0x128   :  { %v878_v23 = vadd.f32 %v877_v24, %v92_v20  ;;  %2248 = vmatpush.msra.mxu1 %v4001_v58  ;;  %2078 = vmatpush.msrb.mxu3 %v2077_v19  ;;  %v2089_v24 = vand.u32 4294901760, %v2088_v13 }
 0x129   :  { %2219 = vmatpush.msra.mxu0 %v4044_v34  ;;  %2116 = vmatpush.msra.mxu2 %v3973_v32 }
 0x12a   :  { %v986_v2 = vpop.f32.mrf.mxu1  ;;  %2250 = vmatpush.msra.mxu1 %v4015_v31  ;;  %2084 = vmatpush.msrb.mxu3 %v2083_v38 }
 0x12b   :  { %v1044_v46 = vpop.f32.mrf.mxu2  ;;  %v987_v39 = vadd.f32 %v986_v2, %v878_v23  ;;  %2119 = vmatpush.msra.mxu2 %v3989_v36 }
 0x12c   :  { %2252 = vmatpush.msra.mxu1 %v4030_v41  ;;  %2090 = vmatpush.msrb.mxu3 %v2089_v24 }
 0x12d   :  { %v1045_v26 = vadd.f32 %v1044_v46, %v987_v39  ;;  %2122 = vmatpush.msra.mxu2 %v4007_v7 }
 0x12e   :  { %v3964_v42 = vpop.f32.mrf.mxu3  ;;  %2152 = vmatpush.msra.mxu3 %v3935_v40 }
 0x12f   :  { %v1089_v37 = vadd.f32 %v3964_v42, %v1045_v26  ;;  %2125 = vmatpush.msra.mxu2 %v2074_v12 }
 0x130   :  { %2154 = vmatpush.msra.mxu3 %v3944_v55 }
 0x131   :  { %2128 = vmatpush.msra.mxu2 %v2080_v11 }
 0x132   :  { %v885_v18 = vpop.f32.mrf.mxu0  ;;  %2156 = vmatpush.msra.mxu3 %v3958_v16 }
 0x133   :  { %v886_v57 = vadd.f32 %v885_v18, %v92_v20  ;;  %2131 = vmatpush.msra.mxu2 %v2086_v59 }
 0x134   :  { %2158 = vmatpush.msra.mxu3 %v3976_v0 }
 0x135   :  { %v990_v47 = vpop.f32.mrf.mxu1  ;;  %v1049_v28 = vpop.f32.mrf.mxu2 }
 0x136   :  { %v991_v22 = vadd.f32 %v990_v47, %v886_v57  ;;  %2160 = vmatpush.msra.mxu3 %v3992_v33 }
 0x138   :  { %v1050_v27 = vadd.f32 %v1049_v28, %v991_v22  ;;  %2162 = vmatpush.msra.mxu3 %v4001_v58 }
 0x139   :  { %v1094_v63 = vpop.f32.mrf.mxu3 }
 0x13a   :  { %v1095_v45 = vadd.f32 %v1094_v63, %v1050_v27  ;;  %2164 = vmatpush.msra.mxu3 %v4015_v31 }
 0x13c   :  { %2166 = vmatpush.msra.mxu3 %v4030_v41 }
 0x13d   :  { %v1163_v61 = vpop.f32.mrf.mxu0 }
 0x13e   :  { %v1164_v2 = vadd.f32 %v1163_v61, %v1089_v37 }
 0x140   :  { %v1204_v54 = vpop.f32.mrf.mxu1  ;;  %v1249_v25 = vpop.f32.mrf.mxu2 }
 0x141   :  { %v1205_v46 = vadd.f32 %v1204_v54, %v1164_v2 }
 0x143   :  { %v1250_v18 = vadd.f32 %v1249_v25, %v1205_v46 }
 0x144   :  { %v1358_v9 = vpop.f32.mrf.mxu3 }
 0x145   :  { %v1359_v32 = vadd.f32 %v1358_v9, %v1250_v18 }
 0x147   :  { %v1167_v20 = vpop.f32.mrf.mxu0 }
 0x148   :  { %v1168_v6 = vadd.f32 %v1167_v20, %v1095_v45 }
 0x14a   :  { %v1208_v52 = vpop.f32.mrf.mxu1 }
 0x14b   :  { %v1257_v3 = vpop.f32.mrf.mxu2  ;;  %v1209_v23 = vadd.f32 %v1208_v52, %v1168_v6 }
 0x14d   :  { %v1258_v36 = vadd.f32 %v1257_v3, %v1209_v23 }
 0x14e   :  { %v1362_v35 = vpop.f32.mrf.mxu3 }
 0x14f   :  { %v1363_v47 = vadd.f32 %v1362_v35, %v1258_v36 }
 0x153   :  { %v1416_v42 = vpop.f32.mrf.mxu0 }
 0x154   :  { %v1417_v48 = vadd.f32 %v1416_v42, %v1359_v32 }
 0x15a   :  { %v1460_v56 = vpop.f32.mrf.mxu1 }
 0x15b   :  { %v1461_v30 = vadd.f32 %v1460_v56, %v1417_v48  ;;  %v1421_v14 = vpop.f32.mrf.mxu0 }
 0x15c   :  { %v1422_v44 = vadd.f32 %v1421_v14, %v1363_v47 }
 0x15d   :  { %v1535_v15 = vpop.f32.mrf.mxu2 }
 0x15e   :  { %v1536_v39 = vadd.f32 %v1535_v15, %v1461_v30 }
 0x15f   :  { %v1576_v7 = vpop.f32.mrf.mxu3 }
 0x160   :  { %v1577_v21 = vadd.f32 %v1576_v7, %v1536_v39 }
 0x162   :  { %2306 = vtanh.f32 %v1577_v21  ;;  %v1466_v12 = vpop.f32.mrf.mxu1 }
 0x163   :  { %v1467_v5 = vadd.f32 %v1466_v12, %v1422_v44 }
 0x165   :  { %v1539_v43 = vpop.f32.mrf.mxu2 }
 0x166   :  { %v1540_v28 = vadd.f32 %v1539_v43, %v1467_v5 }
 0x167   :  { %v1580_v11 = vpop.f32.mrf.mxu3 }
 0x168   :  { %v2307_v26 = vpop.eup %2306  ;;  %v1581_v61 = vadd.f32 %v1580_v11, %v1540_v28 }
 0x169   :  { %v1617_v29 = vsel %vm1615_vm0, %v2307_v26, 0 }
 0x16a   :  { %2308 = vtanh.f32 %v1581_v61  ;;  %v2018_v60 = vand.u32 4294901760, %v1617_v29 }
 0x16c   :  { %2092 = vmatmul.f32.vlgmr.msrb.gmra.mxu3 %v2018_v60  ;;  %2221 = vmatmul.f32.vlgmr.msra.gmra.mxu0 %v2018_v60  ;;  %v2019_v57 = vsub.f32 %v1617_v29, %v2018_v60 }
 0x16d   :  { %2254 = vmatmul.f32.vlgmr.msra.gmra.mxu1 %v2018_v60  ;;  %2290 = vmatpush.msrb.mxu3 %v3935_v40 }
 0x16e   :  { %v2020_v63 = vand.u32 4294901760, %v2019_v57 }
 0x16f   :  { %2291 = vmatpush.msrb.mxu3 %v3944_v55 }
 0x170   :  { %v2309_v49 = vpop.eup %2308  ;;  %v2021_v59 = vsub.f32 %v2019_v57, %v2020_v63 }
 0x171   :  { %v1620_v8 = vsel %vm1615_vm0, %v2309_v49, 0  ;;  %2292 = vmatpush.msrb.mxu3 %v3958_v16 }
 0x172   :  { %v2022_v19 = vand.u32 4294901760, %v2021_v59  ;;  %v2026_v1 = vand.u32 4294901760, %v1620_v8 }
 0x173   :  { %2293 = vmatpush.msrb.mxu3 %v3976_v0 }
 0x174   :  { %2023 = vmatmul.f32.vlgmr.msrb.gmra.mxu2 %v2022_v19  ;;  %2096 = vmatmul.f32.gmra.mxu3 %v2026_v1  ;;  %v2027_v37 = vsub.f32 %v1620_v8, %v2026_v1 }
 0x175   :  { %2282 = vmatpush.msrb.mxu2 %v3952_v50  ;;  %2294 = vmatpush.msrb.mxu3 %v3992_v33 }
 0x176   :  { %v2028_v40 = vand.u32 4294901760, %v2027_v37 }
 0x177   :  { %2283 = vmatpush.msrb.mxu2 %v3970_v51  ;;  %2295 = vmatpush.msrb.mxu3 %v4001_v58  ;;  %v2301_v58 = vld [vmem:[%s4093_s4] ss:$0 sm:$0xff]  ;;  %s2336_s4 = smov [#allocation2]  }
 0x178   :  { %v2029_v55 = vsub.f32 %v2027_v37, %v2028_v40  ;;  %s2268_s21 = sshll.u32 %s2336_s4, 4  ;;  %s2269_s21 = int_to_ptr.vmem [resolvable:$true] %s2268_s21 }
 0x179   :  { %2284 = vmatpush.msrb.mxu2 %v3986_v62  ;;  %2296 = vmatpush.msrb.mxu3 %v4015_v31 }
 0x17a   :  { %v2030_v16 = vand.u32 4294901760, %v2029_v55 }
 0x17b   :  { %2285 = vmatpush.msrb.mxu2 %v4004_v53  ;;  %2297 = vmatpush.msrb.mxu3 %v4030_v41 }
 0x17c   :  { %2031 = vmatmul.f32.gmra.mxu2 %v2030_v16  ;;  %2170 = vmatmul.f32.vlgmr.msra.gmra.mxu3 %v2020_v63 }
 0x17d   :  { %2286 = vmatpush.msrb.mxu2 %v4021_v10 }
 0x17e   :  { %v1769_v62 = vpop.f32.mrf.mxu1 }
 0x17f   :  { %2287 = vmatpush.msrb.mxu2 %v4027_v4 }
 0x181   :  { %2288 = vmatpush.msrb.mxu2 %v4038_v17 }
 0x183   :  { %2289 = vmatpush.msrb.mxu2 %v4044_v34 }
 0x184   :  { %2134 = vmatmul.f32.vlgmr.msra.gmra.mxu2 %v2019_v57  ;;  %2176 = vmatmul.f32.gmra.mxu3 %v2028_v40 }
 0x186   :  { %v1660_v51 = vpop.f32.mrf.mxu0  ;;  %v1827_v0 = vpop.f32.mrf.mxu2 }
 0x187   :  { %v1661_v53 = vadd.f32 %v2301_v58, %v1660_v51 }
 0x188   :  { %v1871_v50 = vpop.f32.mrf.mxu3  ;;  %v1773_v4 = vpop.f32.mrf.mxu1 }
 0x189   :  { %v1770_v17 = vadd.f32 %v1769_v62, %v1661_v53 }
 0x18b   :  { %v1828_v34 = vadd.f32 %v1827_v0, %v1770_v17 }
 0x18c   :  { %2139 = vmatmul.f32.gmra.mxu2 %v2027_v37  ;;  %2258 = vmatmul.f32.vlgmr.msrb.gmra.mxu3 %v2026_v1 }
 0x18d   :  { %v1872_v54 = vadd.f32 %v1871_v50, %v1828_v34 }
 0x18f   :  { %v1668_v31 = vpop.f32.mrf.mxu0  ;;  %v1832_v10 = vpop.f32.mrf.mxu2 }
 0x190   :  { %v1669_v38 = vadd.f32 %v2301_v58, %v1668_v31 }
 0x191   :  { %v1877_v33 = vpop.f32.mrf.mxu3 }
 0x192   :  { %v1774_v2 = vadd.f32 %v1773_v4, %v1669_v38 }
 0x194   :  { %2225 = vmatmul.f32.vlgmr.msrb.gmra.mxu2 %v2026_v1  ;;  %v1833_v9 = vadd.f32 %v1832_v10, %v1774_v2 }
 0x196   :  { %v1878_v18 = vadd.f32 %v1877_v33, %v1833_v9 }
 0x197   :  { %v1946_v13 = vpop.f32.mrf.mxu0 }
 0x198   :  { %v1947_v25 = vadd.f32 %v1946_v13, %v1872_v54 }
 0x19a   :  { %v1987_v24 = vpop.f32.mrf.mxu1 }
 0x19b   :  { %v1988_v45 = vadd.f32 %v1987_v24, %v1947_v25 }
 0x19f   :  { %v1950_v52 = vpop.f32.mrf.mxu0 }
 0x1a0   :  { %v1951_v3 = vadd.f32 %v1950_v52, %v1878_v18 }
 0x1a2   :  { %v1991_v6 = vpop.f32.mrf.mxu1 }
 0x1a3   :  { %v1992_v48 = vadd.f32 %v1991_v6, %v1951_v3 }
 0x1e9   :  { %v2222_v36 = vpop.f32.mrf.mxu0 }
 0x1ea   :  { %v2255_v14 = vpop.f32.mrf.mxu1 }
 0x1ef   :  { %v2093_v41 = vpop.f32.mrf.mxu3 }
 0x1f7   :  { %v2024_v22 = vpop.f32.mrf.mxu2  ;;  %v2097_v27 = vpop.f32.mrf.mxu3 }
 0x1f8   :  { %v2025_v46 = vadd.f32 %v2024_v22, %v1988_v45 }
 0x1fa   :  { %v2094_v32 = vadd.f32 %v2093_v41, %v2025_v46 }
 0x1ff   :  { %v2032_v20 = vpop.f32.mrf.mxu2  ;;  %v2171_v42 = vpop.f32.mrf.mxu3 }
 0x200   :  { %v2033_v30 = vadd.f32 %v2032_v20, %v1992_v48 }
 0x202   :  { %v2098_v21 = vadd.f32 %v2097_v27, %v2033_v30 }
 0x207   :  { %v2135_v23 = vpop.f32.mrf.mxu2  ;;  %v2177_v47 = vpop.f32.mrf.mxu3 }
 0x208   :  { %v2136_v35 = vadd.f32 %v2135_v23, %v2094_v32 }
 0x20a   :  { %v2172_v56 = vadd.f32 %v2171_v42, %v2136_v35 }
 0x20c   :  { %v2223_v15 = vadd.f32 %v2222_v36, %v2172_v56 }
 0x20e   :  { %v2256_v39 = vadd.f32 %v2255_v14, %v2223_v15 }
 0x20f   :  { %v2140_v7 = vpop.f32.mrf.mxu2  ;;  %v2259_v28 = vpop.f32.mrf.mxu3 }
 0x210   :  { %2262 = vst [vmem:[#allocation2] sm:$0xff] %v2256_v39  ;;  %v2141_v44 = vadd.f32 %v2140_v7, %v2098_v21 }
 0x212   :  { %v2178_v12 = vadd.f32 %v2177_v47, %v2141_v44 }
 0x217   :  { %v2226_v5 = vpop.f32.mrf.mxu2 }
 0x218   :  { %v2227_v43 = vadd.f32 %v2226_v5, %v2178_v12 }
 0x21a   :  { %v2260_v11 = vadd.f32 %v2259_v28, %v2227_v43 }
 0x21c   :  { %2263 = vst [vmem:[#allocation2 + $0x8] sm:$0xff] %v2260_v11 }
 0x21d   :  { %2276 = dma.vmem_to_hbm [thread:$0]  %s2269_s21, 256, %s2271_s24, [#allocation3], %s2337_s25, %s2337_s25, %s2338_s1  }
 0x21e   :  { %2334 = dma.done.wait [#allocation3], 256  }
 0x21f   :  { %2335 = vsyncadd [#allocation3], 4294967040 }
 0x220   :  { %2281 = vsyncpa [#allocation3], 1 }

</bundles_post_ra>
